<compile_context>
chip_gen: v7x
topology: tpu7x:2x2x1
jax: 0.10.0
libtpu: 0.0.40
codegen_flags: <defaults>
</compile_context>

<pallas_src>
from functools import partial

import jax
import jax.numpy as jnp
from jax import lax
from jax.experimental import pallas as pl
from jax.experimental.pallas import tpu as pltpu


# ------------------------------- helpers ------------------------------------

_VMEM_LIMIT = 32 * 1024 * 1024  # safe across v5e/v6e/v7x scoped defaults


def _round_up(x, m):
    return ((x + m - 1) // m) * m


def _choose_row_block(d_pad, resident_bytes=0, vmem_budget=8 * 1024 * 1024,
                      max_block=512, dtype_bytes=4):
    """Largest power-of-two row block in [8, max_block] whose double-buffered
    f32 input+output tiles (plus any resident weights) fit the VMEM budget."""
    rb = max_block
    while rb > 8 and (4 * rb * d_pad * dtype_bytes + resident_bytes) > vmem_budget:
        rb //= 2
    return rb


def _masked_layernorm(x, g, b, mask, inv_d, eps):
    """Masked LayerNorm over the (lane-padded) last axis.  x is f32 (rows, Dp);
    `mask` selects the true `dim` lanes; matches torch (biased variance)."""
    xm = x * mask
    mean = jnp.sum(xm, axis=-1, keepdims=True) * inv_d
    xc = (x - mean) * mask                      # reused for var AND output
    var = jnp.sum(xc * xc, axis=-1, keepdims=True) * inv_d
    inv = lax.rsqrt(var + eps)
    return xc * inv * g + b


def _lane_mask(rows, d_pad, d_true):
    return (lax.broadcasted_iota(jnp.int32, (rows, d_pad), 1)
            < d_true).astype(jnp.float32)


def _pad_params(gamma, beta, d_pad, d):
    g = jnp.pad(gamma.astype(jnp.float32), (0, d_pad - d)).reshape(1, d_pad)
    b = jnp.pad(beta.astype(jnp.float32), (0, d_pad - d)).reshape(1, d_pad)
    return g, b


# ----------------------------- kernel bodies --------------------------------

def _layernorm_kernel(x_ref, g_ref, b_ref, o_ref, *, eps, d_true):
    x = x_ref[...].astype(jnp.float32)                       # (rows, Dp)
    rows, d_pad = x.shape
    mask = _lane_mask(rows, d_pad, d_true)
    y = _masked_layernorm(x, g_ref[...], b_ref[...], mask, 1.0 / d_true, eps)
    o_ref[...] = y.astype(o_ref.dtype)


def _linear_relu_kernel(x_ref, w_ref, bias_ref, o_ref):
    h = jnp.dot(x_ref[...].astype(jnp.float32), w_ref[...],
                preferred_element_type=jnp.float32) + bias_ref[...]
    o_ref[...] = jnp.maximum(h, 0.0).astype(o_ref.dtype)


def _ln_linear_relu_kernel(x_ref, g_ref, b_ref, w_ref, bias_ref, o_ref, *,
                           eps, d_true):
    """Fused pre-norm path: relu(LN(x) @ W + bias), one HBM read, one write."""
    x = x_ref[...].astype(jnp.float32)                       # (rows, Dp)
    rows, d_pad = x.shape
    mask = _lane_mask(rows, d_pad, d_true)
    y = _masked_layernorm(x, g_ref[...], b_ref[...], mask, 1.0 / d_true, eps)
    h = jnp.dot(y, w_ref[...], preferred_element_type=jnp.float32) + bias_ref[...]
    o_ref[...] = jnp.maximum(h, 0.0).astype(o_ref.dtype)


def _linear_relu_ln_kernel(x_ref, w_ref, bias_ref, g_ref, b_ref, o_ref, *,
                           eps, d_true):
    """Fused post-norm path: LN(relu(x @ W + bias))."""
    x = x_ref[...].astype(jnp.float32)
    h = jnp.dot(x, w_ref[...], preferred_element_type=jnp.float32) + bias_ref[...]
    h = jnp.maximum(h, 0.0)
    rows, d_pad = h.shape
    mask = _lane_mask(rows, d_pad, d_true)
    y = _masked_layernorm(h, g_ref[...], b_ref[...], mask, 1.0 / d_true, eps)
    o_ref[...] = y.astype(o_ref.dtype)


# ----------------------------- pallas wrappers ------------------------------

def _run_rowwise(kernel, x, extra_inputs, extra_specs, resident_bytes):
    """Common wrapper: flatten (B,S,D)->(N,D), pad rows + lanes, launch a 1-D
    row grid, slice the padding back off."""
    B, S, D = x.shape
    N = B * S
    d_pad = _round_up(D, 128)
    rb = _choose_row_block(d_pad, resident_bytes=resident_bytes)
    n_pad = _round_up(max(N, 1), rb)

    x2 = x.reshape(N, D)
    x2 = jnp.pad(x2, ((0, n_pad - N), (0, d_pad - D)))

    out = pl.pallas_call(
        kernel,
        out_shape=jax.ShapeDtypeStruct((n_pad, d_pad), x.dtype),
        grid=(n_pad // rb,),
        in_specs=[pl.BlockSpec((rb, d_pad), lambda i: (i, 0))] + extra_specs,
        out_specs=pl.BlockSpec((rb, d_pad), lambda i: (i, 0)),
        compiler_params=pltpu.CompilerParams(
            dimension_semantics=("parallel",),
            vmem_limit_bytes=_VMEM_LIMIT),
    )(x2, *extra_inputs)
    return out[:N, :D].reshape(B, S, D)


def layer_norm_pallas(x, gamma, beta, eps=1e-5):
    D = x.shape[-1]
    d_pad = _round_up(D, 128)
    g, b = _pad_params(gamma, beta, d_pad, D)
    vec_spec = pl.BlockSpec((1, d_pad), lambda i: (0, 0))
    return _run_rowwise(
        partial(_layernorm_kernel, eps=eps, d_true=D),
        x, [g, b], [vec_spec, vec_spec],
        resident_bytes=2 * d_pad * 4)


def linear_relu_pallas(x, w, b):
    D = x.shape[-1]
    d_pad = _round_up(D, 128)
    wp = jnp.pad(w.astype(jnp.float32), ((0, d_pad - D), (0, d_pad - D)))
    bp = jnp.pad(b.astype(jnp.float32), (0, d_pad - D)).reshape(1, d_pad)
    w_spec = pl.BlockSpec((d_pad, d_pad), lambda i: (0, 0))
    vec_spec = pl.BlockSpec((1, d_pad), lambda i: (0, 0))
    return _run_rowwise(
        _linear_relu_kernel,
        x, [wp, bp], [w_spec, vec_spec],
        resident_bytes=(d_pad * d_pad + d_pad) * 4)


def ln_linear_relu_fused(x, gamma, beta, w, b, eps=1e-5):
    D = x.shape[-1]
    d_pad = _round_up(D, 128)
    g, bt = _pad_params(gamma, beta, d_pad, D)
    wp = jnp.pad(w.astype(jnp.float32), ((0, d_pad - D), (0, d_pad - D)))
    bp = jnp.pad(b.astype(jnp.float32), (0, d_pad - D)).reshape(1, d_pad)
    vec_spec = pl.BlockSpec((1, d_pad), lambda i: (0, 0))
    w_spec = pl.BlockSpec((d_pad, d_pad), lambda i: (0, 0))
    return _run_rowwise(
        partial(_ln_linear_relu_kernel, eps=eps, d_true=D),
        x, [g, bt, wp, bp], [vec_spec, vec_spec, w_spec, vec_spec],
        resident_bytes=(d_pad * d_pad + 3 * d_pad) * 4)


def linear_relu_ln_fused(x, w, b, gamma, beta, eps=1e-5):
    D = x.shape[-1]
    d_pad = _round_up(D, 128)
    g, bt = _pad_params(gamma, beta, d_pad, D)
    wp = jnp.pad(w.astype(jnp.float32), ((0, d_pad - D), (0, d_pad - D)))
    bp = jnp.pad(b.astype(jnp.float32), (0, d_pad - D)).reshape(1, d_pad)
    vec_spec = pl.BlockSpec((1, d_pad), lambda i: (0, 0))
    w_spec = pl.BlockSpec((d_pad, d_pad), lambda i: (0, 0))
    return _run_rowwise(
        partial(_linear_relu_ln_kernel, eps=eps, d_true=D),
        x, [wp, bp, g, bt], [w_spec, vec_spec, vec_spec, vec_spec],
        resident_bytes=(d_pad * d_pad + 3 * d_pad) * 4)


# ----------------------------- module wrappers -------------------------------

class LinearReLU:
    """Injected `fn`: Linear(dim, dim) + ReLU, returning a tuple (like the
    PyTorch callables PrePostNorm expects)."""

    def __init__(self, w, b):
        self.w = w
        self.b = b

    def __call__(self, x):
        return (linear_relu_pallas(x, self.w, self.b),)


class PrePostNorm:
    """JAX/Pallas port of dpfp_pytorch PrePostNorm.

    forward:
        if pre:  x = LN(x)
        x, *args = fn(x, **kwargs)
        if not pre: x = LN(x)
        return (x, *args) if args else x

    When `fn` is a LinearReLU the LN + Linear + ReLU are fused into a single
    Pallas kernel (no intermediate HBM round trip); any other callable uses
    the generic standalone-LN path.
    """

    def __init__(self, dim, pre, fn, eps=1e-5):
        # nn.LayerNorm default init: weight = 1, bias = 0 (deterministic)
        self.gamma = jnp.ones((dim,), jnp.float32)
        self.beta = jnp.zeros((dim,), jnp.float32)
        self.eps = eps
        self.fn = fn
        self.pre = pre

    def __call__(self, x, **kwargs):
        if isinstance(self.fn, LinearReLU) and not kwargs:
            if self.pre:
                return ln_linear_relu_fused(x, self.gamma, self.beta,
                                            self.fn.w, self.fn.b, self.eps)
            return linear_relu_ln_fused(x, self.fn.w, self.fn.b,
                                        self.gamma, self.beta, self.eps)
        # generic (unfused) fallback for arbitrary injected callables
        if self.pre:
            x = layer_norm_pallas(x, self.gamma, self.beta, self.eps)
        out = self.fn(x, **kwargs)
        x, *args = out
        if not self.pre:
            x = layer_norm_pallas(x, self.gamma, self.beta, self.eps)
        if len(args):
            return (x, *args)
        return x


# ------------------------------------ main ----------------------------------

if __name__ == "__main__":
    B, S, D = 2, 8, 32  # batch=2, seq=8, hidden=32
    key = jax.random.PRNGKey(0)
    kx, kw, kb = jax.random.split(key, 3)

    x = jax.random.normal(kx, (B, S, D), jnp.float32)
    w = jax.random.normal(kw, (D, D), jnp.float32) * 0.1
    b = jax.random.normal(kb, (D,), jnp.float32) * 0.1

    fn = LinearReLU(w, b)

    # pre-norm variant (fused LN -> Linear -> ReLU kernel)
    module_pre = PrePostNorm(D, pre=True, fn=fn)
    y_pre = module_pre(x)
    jax.block_until_ready(y_pre)

    # post-norm variant (fused Linear -> ReLU -> LN kernel)
    module_post = PrePostNorm(D, pre=False, fn=fn)
    y_post = module_post(x)
    jax.block_until_ready(y_post)

    # generic fallback path (arbitrary injected callable, unfused LN kernel)
    module_gen = PrePostNorm(D, pre=True,
                             fn=lambda z: (linear_relu_pallas(z, w, b),))
    y_gen = module_gen(x)
    jax.block_until_ready(y_gen)

    # reference check against plain JAX
    def ln_ref(z, g, bb, eps=1e-5):
        m = jnp.mean(z, axis=-1, keepdims=True)
        v = jnp.mean((z - m) ** 2, axis=-1, keepdims=True)
        return (z - m) / jnp.sqrt(v + eps) * g + bb

    def fn_ref(z):
        return jnp.maximum(jnp.einsum("bsd,de->bse", z, w) + b, 0.0)

    ref_pre = fn_ref(ln_ref(x, module_pre.gamma, module_pre.beta))
    ref_post = ln_ref(fn_ref(x), module_post.gamma, module_post.beta)

    assert jnp.allclose(y_pre, ref_pre, atol=1e-4, rtol=1e-4)
    assert jnp.allclose(y_post, ref_post, atol=1e-4, rtol=1e-4)
    assert jnp.allclose(y_gen, ref_pre, atol=1e-4, rtol=1e-4)

    print("KERNEL_OK")
</pallas_src>

<mosaic_0001>
module attributes {stable_mosaic.version = 11 : i64} {
  func.func @_ln_linear_relu_kernel(%arg0: i32, %arg1: memref<512x128xf32, #tpu.memory_space<vmem>>, %arg2: memref<1x128xf32, #tpu.memory_space<vmem>>, %arg3: memref<1x128xf32, #tpu.memory_space<vmem>>, %arg4: memref<128x128xf32, #tpu.memory_space<vmem>>, %arg5: memref<1x128xf32, #tpu.memory_space<vmem>>, %arg6: memref<512x128xf32, #tpu.memory_space<vmem>>) attributes {dimension_semantics = [#tpu.dimension_semantics<parallel>], iteration_bounds = array<i64: 1>, scalar_prefetch = 0 : i64, scratch_operands = 0 : i64, tpu.core_type = #tpu.core_type<tc>, window_params = [{transform_indices = @transform_0, window_bounds = array<i64: 512, 128>}, {pipeline_mode = #tpu.pipeline_mode<synchronous>, transform_indices = @transform_1, window_bounds = array<i64: 1, 128>}, {pipeline_mode = #tpu.pipeline_mode<synchronous>, transform_indices = @transform_2, window_bounds = array<i64: 1, 128>}, {pipeline_mode = #tpu.pipeline_mode<synchronous>, transform_indices = @transform_3, window_bounds = array<i64: 128, 128>}, {pipeline_mode = #tpu.pipeline_mode<synchronous>, transform_indices = @transform_4, window_bounds = array<i64: 1, 128>}, {transform_indices = @transform_5, window_bounds = array<i64: 512, 128>}]} {
    %c0 = arith.constant 0 : index
    %c0_0 = arith.constant 0 : index
    %0 = vector.load %arg1[%c0, %c0_0] : memref<512x128xf32, #tpu.memory_space<vmem>>, vector<512x128xf32>
    %1 = tpu.iota {dimensions = array<i32: 1>} : vector<512x128xi32>
    %c32_i32 = arith.constant 32 : i32
    %2 = vector.broadcast %c32_i32 : i32 to vector<512x128xi32>
    %3 = arith.cmpi slt, %1, %2 : vector<512x128xi32>
    %4 = arith.extui %3 : vector<512x128xi1> to vector<512x128xi32>
    %5 = arith.sitofp %4 : vector<512x128xi32> to vector<512x128xf32>
    %c0_1 = arith.constant 0 : index
    %c0_2 = arith.constant 0 : index
    %6 = vector.load %arg2[%c0_1, %c0_2] : memref<1x128xf32, #tpu.memory_space<vmem>>, vector<1x128xf32>
    %c0_3 = arith.constant 0 : index
    %c0_4 = arith.constant 0 : index
    %7 = vector.load %arg3[%c0_3, %c0_4] : memref<1x128xf32, #tpu.memory_space<vmem>>, vector<1x128xf32>
    %8 = arith.mulf %0, %5 : vector<512x128xf32>
    %cst = arith.constant dense<0.000000e+00> : vector<512xf32>
    %9 = vector.multi_reduction <add>, %8, %cst [1] : vector<512x128xf32> to vector<512xf32>
    %10 = vector.shape_cast %9 : vector<512xf32> to vector<512x1xf32>
    %cst_5 = arith.constant 3.125000e-02 : f32
    %11 = vector.broadcast %cst_5 : f32 to vector<512x1xf32>
    %12 = arith.mulf %10, %11 : vector<512x1xf32>
    %13 = vector.broadcast %12 : vector<512x1xf32> to vector<512x128xf32>
    %14 = arith.subf %0, %13 : vector<512x128xf32>
    %15 = arith.mulf %14, %5 : vector<512x128xf32>
    %16 = arith.mulf %15, %15 : vector<512x128xf32>
    %cst_6 = arith.constant dense<0.000000e+00> : vector<512xf32>
    %17 = vector.multi_reduction <add>, %16, %cst_6 [1] : vector<512x128xf32> to vector<512xf32>
    %18 = vector.shape_cast %17 : vector<512xf32> to vector<512x1xf32>
    %cst_7 = arith.constant 3.125000e-02 : f32
    %19 = vector.broadcast %cst_7 : f32 to vector<512x1xf32>
    %20 = arith.mulf %18, %19 : vector<512x1xf32>
    %cst_8 = arith.constant 9.99999974E-6 : f32
    %21 = vector.broadcast %cst_8 : f32 to vector<512x1xf32>
    %22 = arith.addf %20, %21 : vector<512x1xf32>
    %23 = math.rsqrt %22 : vector<512x1xf32>
    %24 = vector.broadcast %23 : vector<512x1xf32> to vector<512x128xf32>
    %25 = arith.mulf %15, %24 : vector<512x128xf32>
    %26 = vector.broadcast %6 : vector<1x128xf32> to vector<512x128xf32>
    %27 = arith.mulf %25, %26 : vector<512x128xf32>
    %28 = vector.broadcast %7 : vector<1x128xf32> to vector<512x128xf32>
    %29 = arith.addf %27, %28 : vector<512x128xf32>
    %c0_9 = arith.constant 0 : index
    %c0_10 = arith.constant 0 : index
    %30 = vector.load %arg4[%c0_9, %c0_10] : memref<128x128xf32, #tpu.memory_space<vmem>>, vector<128x128xf32>
    %cst_11 = arith.constant dense<0.000000e+00> : vector<512x128xf32>
    %31 = tpu.matmul %29, %30, %cst_11 {dimension_numbers = #tpu.dot_dimension_numbers<[1], [0], [0], [1], [0, 0, 1, 1], [], []>} : vector<512x128xf32>, vector<128x128xf32>, vector<512x128xf32> -> vector<512x128xf32>
    %c0_12 = arith.constant 0 : index
    %c0_13 = arith.constant 0 : index
    %32 = vector.load %arg5[%c0_12, %c0_13] : memref<1x128xf32, #tpu.memory_space<vmem>>, vector<1x128xf32>
    %33 = vector.broadcast %32 : vector<1x128xf32> to vector<512x128xf32>
    %34 = arith.addf %31, %33 : vector<512x128xf32>
    %cst_14 = arith.constant 0.000000e+00 : f32
    %35 = vector.broadcast %cst_14 : f32 to vector<512x128xf32>
    %36 = arith.maximumf %34, %35 : vector<512x128xf32>
    %c0_15 = arith.constant 0 : index
    %c0_16 = arith.constant 0 : index
    %37 = vector.load %arg6[%c0_15, %c0_16] : memref<512x128xf32, #tpu.memory_space<vmem>>, vector<512x128xf32>
    tpu.vector_store %arg6[%c0_15, %c0_16], %36 {strides = array<i32>} : memref<512x128xf32, #tpu.memory_space<vmem>>, vector<512x128xf32>,
    return
  }
  func.func @transform_0(%arg0: i32) -> (i32, i32) {
    %c0_i32 = arith.constant 0 : i32
    %c0_i32_0 = arith.constant 0 : i32
    return %arg0, %c0_i32 : i32, i32
  }
  func.func @transform_1(%arg0: i32) -> (i32, i32) {
    %c0_i32 = arith.constant 0 : i32
    %c0_i32_0 = arith.constant 0 : i32
    %c0_i32_1 = arith.constant 0 : i32
    return %c0_i32, %c0_i32_0 : i32, i32
  }
  func.func @transform_2(%arg0: i32) -> (i32, i32) {
    %c0_i32 = arith.constant 0 : i32
    %c0_i32_0 = arith.constant 0 : i32
    %c0_i32_1 = arith.constant 0 : i32
    return %c0_i32, %c0_i32_0 : i32, i32
  }
  func.func @transform_3(%arg0: i32) -> (i32, i32) {
    %c0_i32 = arith.constant 0 : i32
    %c0_i32_0 = arith.constant 0 : i32
    %c0_i32_1 = arith.constant 0 : i32
    return %c0_i32, %c0_i32_0 : i32, i32
  }
  func.func @transform_4(%arg0: i32) -> (i32, i32) {
    %c0_i32 = arith.constant 0 : i32
    %c0_i32_0 = arith.constant 0 : i32
    %c0_i32_1 = arith.constant 0 : i32
    return %c0_i32, %c0_i32_0 : i32, i32
  }
  func.func @transform_5(%arg0: i32) -> (i32, i32) {
    %c0_i32 = arith.constant 0 : i32
    %c0_i32_0 = arith.constant 0 : i32
    return %arg0, %c0_i32 : i32, i32
  }
}

</mosaic_0001>

<bundles_post_ra>
// kernel: tpu_custom_call.1
= control target key start
LH: loop header
LB: loop body
LE: loop exit
PB: predicated region body
PF: predicated region fallthrough
CT: control target
= control target key end

     0   :  { %10 = vsyncpa [#allocation3], 0  ;;  %s3100_s0 = inlined_call_operand.hbm [shape: f32[512,128], index: 0, kind: input, shape index: {}]   ;;  %s3101_s1 = inlined_call_operand.vmem [shape: f32[1,128], index: 1, kind: input, shape index: {}]   ;;  %s3102_s2 = inlined_call_operand.vmem [shape: f32[1,128], index: 2, kind: input, shape index: {}]   ;;  %s3103_s3 = inlined_call_operand.hbm [shape: f32[128,128], index: 3, kind: input, shape index: {}]   ;;  %s3104_s4 = inlined_call_operand.vmem [shape: f32[1,128], index: 4, kind: input, shape index: {}]   ;;  %s3105_s5 = inlined_call_operand.hbm [shape: f32[512,128], index: 5, kind: output, shape index: {}]  }
   0x1   :  { %11 = vsyncpa [#allocation6], 0 }
   0x2   :  { %12 = vsyncpa [#allocation4], 0  ;;  %s2114_s18 = smov [#allocation2]   ;;  %s2042_s22 = scalar_lea.hbm %s3100_s0, 8192 }
   0x3   :  { %s18_s19 = sshll.u32 %s2114_s18, 4  ;;  %p2043_p0 = scmp.ne.s32.totalorder %s3100_s0, %s2042_s22  ;;  %s19_s19 = int_to_ptr.vmem [resolvable:$true] %s18_s19 }
   0x4   :  { %p2046_p1 = scmp.lt.u32.totalorder %s2042_s22, %s3100_s0 }
   0x6   :  { %p2048_p2 = pnand %p2046_p1, %p2043_p0 }
   0x8   :  { %2051 = shalt.err (!%p2048_p2)
}
   0x9   :  { %s2052_s27 = scalar_lea.vmem %s19_s19, 8192  ;;  %p2057_p4 = scmp.lt.s32.totalorder %s19_s19, %s19_s19 }
   0xa   :  { %p2053_p3 = scmp.ne.s32.totalorder %s19_s19, %s2052_s27  ;;  %p2058_p5 = scmp.lt.s32.totalorder %s2052_s27, %s2052_s27 }
   0xc   :  { %p2059_p6 = por %p2058_p5, %p2057_p4 }
   0xe   :  { %p2060_p7 = pnand %p2059_p6, %p2053_p3 }
  0x10   :  { %2063 = shalt.err (!%p2060_p7)
}
  0x11   :  { %s2115_s28 = smov 128   ;;  %s2116_s29 = smov 8  }
  0x12   :  { %24 = dma.hbm_to_vmem [thread:$0]  %s3100_s0, 8192, %s19_s19, [#allocation3], %s2115_s28, %s2115_s28, %s2116_s29  }
  0x13   :  { %s2117_s7 = smov [#allocation5]   ;;  %s2064_s11 = scalar_lea.hbm %s3103_s3, 2048 }
  0x14   :  { %s34_s8 = sshll.u32 %s2117_s7, 4  ;;  %p2065_p8 = scmp.ne.s32.totalorder %s3103_s3, %s2064_s11  ;;  %s35_s8 = int_to_ptr.vmem [resolvable:$true] %s34_s8 }
  0x15   :  { %p2068_p9 = scmp.lt.u32.totalorder %s2064_s11, %s3103_s3 }
  0x17   :  { %p2070_p10 = pnand %p2068_p9, %p2065_p8 }
  0x19   :  { %2073 = shalt.err (!%p2070_p10)
}
  0x1a   :  { %s2074_s16 = scalar_lea.vmem %s35_s8, 2048  ;;  %p2079_p12 = scmp.lt.s32.totalorder %s35_s8, %s35_s8 }
  0x1b   :  { %p2075_p11 = scmp.ne.s32.totalorder %s35_s8, %s2074_s16  ;;  %p2080_p13 = scmp.lt.s32.totalorder %s2074_s16, %s2074_s16 }
  0x1d   :  { %p2081_p0 = por %p2080_p13, %p2079_p12 }
  0x1f   :  { %p2082_p1 = pnand %p2081_p0, %p2075_p11 }
  0x21   :  { %2085 = shalt.err (!%p2082_p1)
}
  0x22   :  { %40 = dma.hbm_to_vmem [thread:$0]  %s3103_s3, 2048, %s35_s8, [#allocation6], %s2115_s28, %s2115_s28, %s2116_s29  }
  0x23   :  { %2108 = dma.done.wait [#allocation3], 8192  }
  0x24   :  { %2109 = vsyncadd [#allocation3], 4294959104 }
  0x25   :  { %2110 = dma.done.wait [#allocation6], 2048  }
  0x26   :  { %2111 = vsyncadd [#allocation6], 4294965248  ;;  %v113_v0 = vlaneseq  ;;  %v2118_v2 = vmov 0.0   ;;  %v2182_v4 = vld [vmem:[#allocation2] sm:$0xff]  ;;  %v2184_v5 = vld [vmem:[#allocation2 + $0x8] sm:$0xff] }
  0x27   :  { %v2186_v6 = vld [vmem:[#allocation2 + $0x100] sm:$0xff]  ;;  %v2192_v9 = vld [vmem:[#allocation2 + $0x108] sm:$0xff]  ;;  %v2198_v12 = vld [vmem:[#allocation2 + $0x10] sm:$0xff] }
  0x28   :  { %v114_v1 = vand.u32 127, %v113_v0  ;;  %v2200_v13 = vld [vmem:[#allocation2 + $0x110] sm:$0xff]  ;;  %v2206_v16 = vld [vmem:[#allocation2 + $0x18] sm:$0xff]  ;;  %v2214_v20 = vld [vmem:[#allocation2 + $0x20] sm:$0xff] }
  0x29   :  { %v2208_v17 = vld [vmem:[#allocation2 + $0x118] sm:$0xff]  ;;  %v2216_v21 = vld [vmem:[#allocation2 + $0x120] sm:$0xff]  ;;  %v2222_v24 = vld [vmem:[#allocation2 + $0x28] sm:$0xff] }
  0x2a   :  { %vm115_vm0 = vcmp.lt.s32.totalorder %v114_v1, 32  ;;  %v2224_v25 = vld [vmem:[#allocation2 + $0x128] sm:$0xff]  ;;  %v2230_v28 = vld [vmem:[#allocation2 + $0x30] sm:$0xff]  ;;  %v2238_v32 = vld [vmem:[#allocation2 + $0x38] sm:$0xff] }
  0x2b   :  { %v2180_v3 = vsel %vm115_vm0, 1.0, %v2118_v2  ;;  %v2232_v29 = vld [vmem:[#allocation2 + $0x130] sm:$0xff]  ;;  %v2240_v33 = vld [vmem:[#allocation2 + $0x138] sm:$0xff]  ;;  %v2246_v36 = vld [vmem:[#allocation2 + $0x40] sm:$0xff] }
  0x2c   :  { %v120_v7 = vmul.f32 %v2180_v3, %v2182_v4  ;;  %v121_v8 = vmul.f32 %v2180_v3, %v2184_v5  ;;  %v152_v10 = vmul.f32 %v2180_v3, %v2186_v6  ;;  %v153_v11 = vmul.f32 %v2180_v3, %v2192_v9  ;;  %v2248_v37 = vld [vmem:[#allocation2 + $0x140] sm:$0xff]  ;;  %v2254_v40 = vld [vmem:[#allocation2 + $0x48] sm:$0xff]  ;;  %v2262_v44 = vld [vmem:[#allocation2 + $0x50] sm:$0xff] }
  0x2d   :  { %v122_v14 = vmul.f32 %v2180_v3, %v2198_v12  ;;  %v154_v15 = vmul.f32 %v2180_v3, %v2200_v13  ;;  %v123_v18 = vmul.f32 %v2180_v3, %v2206_v16  ;;  %v155_v19 = vmul.f32 %v2180_v3, %v2208_v17  ;;  %v2256_v41 = vld [vmem:[#allocation2 + $0x148] sm:$0xff]  ;;  %v2264_v45 = vld [vmem:[#allocation2 + $0x150] sm:$0xff]  ;;  %v2270_v48 = vld [vmem:[#allocation2 + $0x58] sm:$0xff] }
  0x2e   :  { %184 = vadd.xlane.f32.xlu0 %v120_v7  ;;  %186 = vadd.xlane.f32.xlu1 %v121_v8  ;;  %v124_v22 = vmul.f32 %v2180_v3, %v2214_v20  ;;  %v156_v23 = vmul.f32 %v2180_v3, %v2216_v21  ;;  %v125_v26 = vmul.f32 %v2180_v3, %v2222_v24  ;;  %v2272_v49 = vld [vmem:[#allocation2 + $0x158] sm:$0xff]  ;;  %v2278_v52 = vld [vmem:[#allocation2 + $0x60] sm:$0xff]  ;;  %v2286_v56 = vld [vmem:[#allocation2 + $0x68] sm:$0xff] }
  0x2f   :  { %v157_v27 = vmul.f32 %v2180_v3, %v2224_v25  ;;  %v126_v30 = vmul.f32 %v2180_v3, %v2230_v28  ;;  %v158_v31 = vmul.f32 %v2180_v3, %v2232_v29  ;;  %v127_v34 = vmul.f32 %v2180_v3, %v2238_v32  ;;  %v2280_v53 = vld [vmem:[#allocation2 + $0x160] sm:$0xff]  ;;  %v2288_v57 = vld [vmem:[#allocation2 + $0x168] sm:$0xff]  ;;  %v2294_v60 = vld [vmem:[#allocation2 + $0x70] sm:$0xff] }
  0x30   :  { %v159_v35 = vmul.f32 %v2180_v3, %v2240_v33  ;;  %v128_v38 = vmul.f32 %v2180_v3, %v2246_v36  ;;  %v160_v39 = vmul.f32 %v2180_v3, %v2248_v37  ;;  %v129_v42 = vmul.f32 %v2180_v3, %v2254_v40  ;;  %v2296_v61 = vld [vmem:[#allocation2 + $0x170] sm:$0xff]  ;;  %v2302_v0 = vld [vmem:[#allocation2 + $0x78] sm:$0xff]  ;;  %v2310_v8 = vld [vmem:[#allocation2 + $0x80] sm:$0xff] }
  0x31   :  { %v161_v43 = vmul.f32 %v2180_v3, %v2256_v41  ;;  %v130_v46 = vmul.f32 %v2180_v3, %v2262_v44  ;;  %v162_v47 = vmul.f32 %v2180_v3, %v2264_v45  ;;  %v131_v50 = vmul.f32 %v2180_v3, %v2270_v48  ;;  %v2304_v1 = vld [vmem:[#allocation2 + $0x178] sm:$0xff] }
  0x32   :  { %248 = vadd.xlane.f32.xlu0 %v152_v10  ;;  %250 = vadd.xlane.f32.xlu1 %v153_v11  ;;  %v163_v51 = vmul.f32 %v2180_v3, %v2272_v49  ;;  %v132_v54 = vmul.f32 %v2180_v3, %v2278_v52  ;;  %v164_v55 = vmul.f32 %v2180_v3, %v2280_v53  ;;  %v2312_v10 = vld [vmem:[#allocation2 + $0x180] sm:$0xff] }
  0x33   :  { %v133_v58 = vmul.f32 %v2180_v3, %v2286_v56  ;;  %v165_v59 = vmul.f32 %v2180_v3, %v2288_v57  ;;  %v134_v62 = vmul.f32 %v2180_v3, %v2294_v60  ;;  %v166_v63 = vmul.f32 %v2180_v3, %v2296_v61 }
  0x34   :  { %v135_v2 = vmul.f32 %v2180_v3, %v2302_v0  ;;  %v167_v7 = vmul.f32 %v2180_v3, %v2304_v1  ;;  %v136_v11 = vmul.f32 %v2180_v3, %v2310_v8 }
  0x36   :  { %188 = vadd.xlane.f32.xlu0 %v122_v14  ;;  %252 = vadd.xlane.f32.xlu1 %v154_v15  ;;  %v168_v14 = vmul.f32 %v2180_v3, %v2312_v10  ;;  %v2318_v15 = vld [vmem:[#allocation2 + $0x88] sm:$0xff] }
  0x3a   :  { %190 = vadd.xlane.f32.xlu0 %v123_v18  ;;  %254 = vadd.xlane.f32.xlu1 %v155_v19  ;;  %v2320_v18 = vld [vmem:[#allocation2 + $0x188] sm:$0xff]  ;;  %v137_v19 = vmul.f32 %v2180_v3, %v2318_v15 }
  0x3e   :  { %192 = vadd.xlane.f32.xlu0 %v124_v22  ;;  %256 = vadd.xlane.f32.xlu1 %v156_v23  ;;  %v169_v22 = vmul.f32 %v2180_v3, %v2320_v18  ;;  %v2326_v23 = vld [vmem:[#allocation2 + $0x90] sm:$0xff] }
  0x42   :  { %194 = vadd.xlane.f32.xlu0 %v125_v26  ;;  %258 = vadd.xlane.f32.xlu1 %v157_v27  ;;  %v2328_v26 = vld [vmem:[#allocation2 + $0x190] sm:$0xff]  ;;  %v138_v27 = vmul.f32 %v2180_v3, %v2326_v23 }
  0x46   :  { %196 = vadd.xlane.f32.xlu0 %v126_v30  ;;  %260 = vadd.xlane.f32.xlu1 %v158_v31  ;;  %v170_v30 = vmul.f32 %v2180_v3, %v2328_v26  ;;  %v2334_v31 = vld [vmem:[#allocation2 + $0x98] sm:$0xff] }
  0x4a   :  { %198 = vadd.xlane.f32.xlu0 %v127_v34  ;;  %262 = vadd.xlane.f32.xlu1 %v159_v35  ;;  %v2336_v34 = vld [vmem:[#allocation2 + $0x198] sm:$0xff]  ;;  %v139_v35 = vmul.f32 %v2180_v3, %v2334_v31 }
  0x4e   :  { %200 = vadd.xlane.f32.xlu0 %v128_v38  ;;  %264 = vadd.xlane.f32.xlu1 %v160_v39  ;;  %v171_v38 = vmul.f32 %v2180_v3, %v2336_v34  ;;  %v2342_v39 = vld [vmem:[#allocation2 + $0xa0] sm:$0xff] }
  0x52   :  { %202 = vadd.xlane.f32.xlu0 %v129_v42  ;;  %266 = vadd.xlane.f32.xlu1 %v161_v43  ;;  %v2344_v42 = vld [vmem:[#allocation2 + $0x1a0] sm:$0xff]  ;;  %v140_v43 = vmul.f32 %v2180_v3, %v2342_v39 }
  0x56   :  { %204 = vadd.xlane.f32.xlu0 %v130_v46  ;;  %268 = vadd.xlane.f32.xlu1 %v162_v47  ;;  %v172_v46 = vmul.f32 %v2180_v3, %v2344_v42  ;;  %v2350_v47 = vld [vmem:[#allocation2 + $0xa8] sm:$0xff] }
  0x5a   :  { %206 = vadd.xlane.f32.xlu0 %v131_v50  ;;  %270 = vadd.xlane.f32.xlu1 %v163_v51  ;;  %v2352_v50 = vld [vmem:[#allocation2 + $0x1a8] sm:$0xff]  ;;  %v141_v51 = vmul.f32 %v2180_v3, %v2350_v47 }
  0x5e   :  { %208 = vadd.xlane.f32.xlu0 %v132_v54  ;;  %272 = vadd.xlane.f32.xlu1 %v164_v55  ;;  %v173_v54 = vmul.f32 %v2180_v3, %v2352_v50  ;;  %v2358_v55 = vld [vmem:[#allocation2 + $0xb0] sm:$0xff] }
  0x62   :  { %210 = vadd.xlane.f32.xlu0 %v133_v58  ;;  %274 = vadd.xlane.f32.xlu1 %v165_v59  ;;  %v2360_v58 = vld [vmem:[#allocation2 + $0x1b0] sm:$0xff]  ;;  %v142_v59 = vmul.f32 %v2180_v3, %v2358_v55 }
  0x66   :  { %212 = vadd.xlane.f32.xlu0 %v134_v62  ;;  %276 = vadd.xlane.f32.xlu1 %v166_v63  ;;  %v174_v62 = vmul.f32 %v2180_v3, %v2360_v58  ;;  %v2366_v63 = vld [vmem:[#allocation2 + $0xb8] sm:$0xff] }
  0x6a   :  { %214 = vadd.xlane.f32.xlu0 %v135_v2  ;;  %278 = vadd.xlane.f32.xlu1 %v167_v7  ;;  %v2368_v2 = vld [vmem:[#allocation2 + $0x1b8] sm:$0xff]  ;;  %v143_v7 = vmul.f32 %v2180_v3, %v2366_v63 }
  0x6e   :  { %216 = vadd.xlane.f32.xlu0 %v136_v11  ;;  %280 = vadd.xlane.f32.xlu1 %v168_v14  ;;  %v175_v11 = vmul.f32 %v2180_v3, %v2368_v2  ;;  %v2374_v14 = vld [vmem:[#allocation2 + $0xc0] sm:$0xff] }
  0x6f   :  { %3144 = vst [vmem:[#allocation11_spill] sm:$0xff] %v2374_v14 }
  0x72   :  { %218 = vadd.xlane.f32.xlu0 %v137_v19  ;;  %282 = vadd.xlane.f32.xlu1 %v169_v22  ;;  %v2376_v19 = vld [vmem:[#allocation2 + $0x1c0] sm:$0xff]  ;;  %v144_v22 = vmul.f32 %v2180_v3, %v2374_v14 }
  0x73   :  { %3145 = vst [vmem:[#allocation12_spill] sm:$0xff] %v2376_v19 }
  0x76   :  { %220 = vadd.xlane.f32.xlu0 %v138_v27  ;;  %284 = vadd.xlane.f32.xlu1 %v170_v30  ;;  %v176_v27 = vmul.f32 %v2180_v3, %v2376_v19  ;;  %v2382_v30 = vld [vmem:[#allocation2 + $0xc8] sm:$0xff] }
  0x77   :  { %3146 = vst [vmem:[#allocation13_spill] sm:$0xff] %v2382_v30 }
  0x7a   :  { %222 = vadd.xlane.f32.xlu0 %v139_v35  ;;  %286 = vadd.xlane.f32.xlu1 %v171_v38  ;;  %v2384_v35 = vld [vmem:[#allocation2 + $0x1c8] sm:$0xff]  ;;  %v145_v38 = vmul.f32 %v2180_v3, %v2382_v30 }
  0x7b   :  { %3147 = vst [vmem:[#allocation14_spill] sm:$0xff] %v2384_v35 }
  0x7e   :  { %224 = vadd.xlane.f32.xlu0 %v140_v43  ;;  %288 = vadd.xlane.f32.xlu1 %v172_v46  ;;  %v177_v43 = vmul.f32 %v2180_v3, %v2384_v35  ;;  %v2390_v46 = vld [vmem:[#allocation2 + $0xd0] sm:$0xff] }
  0x7f   :  { %3148 = vst [vmem:[#allocation15_spill] sm:$0xff] %v2390_v46 }
  0x82   :  { %226 = vadd.xlane.f32.xlu0 %v141_v51  ;;  %290 = vadd.xlane.f32.xlu1 %v173_v54  ;;  %v2392_v51 = vld [vmem:[#allocation2 + $0x1d0] sm:$0xff]  ;;  %v146_v54 = vmul.f32 %v2180_v3, %v2390_v46 }
  0x83   :  { %3149 = vst [vmem:[#allocation16_spill] sm:$0xff] %v2392_v51 }
  0x86   :  { %228 = vadd.xlane.f32.xlu0 %v142_v59  ;;  %292 = vadd.xlane.f32.xlu1 %v174_v62  ;;  %v178_v59 = vmul.f32 %v2180_v3, %v2392_v51  ;;  %v2398_v62 = vld [vmem:[#allocation2 + $0xd8] sm:$0xff] }
  0x87   :  { %3150 = vst [vmem:[#allocation17_spill] sm:$0xff] %v2398_v62 }
  0x8a   :  { %230 = vadd.xlane.f32.xlu0 %v143_v7  ;;  %294 = vadd.xlane.f32.xlu1 %v175_v11  ;;  %v2400_v7 = vld [vmem:[#allocation2 + $0x1d8] sm:$0xff]  ;;  %v147_v11 = vmul.f32 %v2180_v3, %v2398_v62 }
  0x8b   :  { %3151 = vst [vmem:[#allocation18_spill] sm:$0xff] %v2400_v7 }
  0x8e   :  { %232 = vadd.xlane.f32.xlu0 %v144_v22  ;;  %296 = vadd.xlane.f32.xlu1 %v176_v27  ;;  %v179_v22 = vmul.f32 %v2180_v3, %v2400_v7  ;;  %v2406_v27 = vld [vmem:[#allocation2 + $0xe0] sm:$0xff] }
  0x8f   :  { %3152 = vst [vmem:[#allocation19_spill] sm:$0xff] %v2406_v27 }
  0x92   :  { %234 = vadd.xlane.f32.xlu0 %v145_v38  ;;  %298 = vadd.xlane.f32.xlu1 %v177_v43  ;;  %v2408_v38 = vld [vmem:[#allocation2 + $0x1e0] sm:$0xff]  ;;  %v148_v43 = vmul.f32 %v2180_v3, %v2406_v27 }
  0x93   :  { %3153 = vst [vmem:[#allocation20_spill] sm:$0xff] %v2408_v38  ;;  %v180_v51 = vmul.f32 %v2180_v3, %v2408_v38 }
  0x96   :  { %236 = vadd.xlane.f32.xlu0 %v146_v54  ;;  %300 = vadd.xlane.f32.xlu1 %v178_v59  ;;  %v2414_v54 = vld [vmem:[#allocation2 + $0xe8] sm:$0xff] }
  0x97   :  { %3154 = vst [vmem:[#allocation21_spill] sm:$0xff] %v2414_v54  ;;  %v2416_v59 = vld [vmem:[#allocation2 + $0x1e8] sm:$0xff]  ;;  %v149_v7 = vmul.f32 %v2180_v3, %v2414_v54 }
  0x98   :  { %3155 = vst [vmem:[#allocation22_spill] sm:$0xff] %v2416_v59  ;;  %v181_v62 = vmul.f32 %v2180_v3, %v2416_v59 }
  0x9a   :  { %238 = vadd.xlane.f32.xlu0 %v147_v11  ;;  %302 = vadd.xlane.f32.xlu1 %v179_v22  ;;  %v2422_v11 = vld [vmem:[#allocation2 + $0xf0] sm:$0xff] }
  0x9b   :  { %3156 = vst [vmem:[#allocation23_spill] sm:$0xff] %v2422_v11  ;;  %v2424_v22 = vld [vmem:[#allocation2 + $0x1f0] sm:$0xff]  ;;  %v150_v38 = vmul.f32 %v2180_v3, %v2422_v11 }
  0x9c   :  { %3157 = vst [vmem:[#allocation24_spill] sm:$0xff] %v2424_v22  ;;  %v182_v27 = vmul.f32 %v2180_v3, %v2424_v22 }
  0x9e   :  { %240 = vadd.xlane.f32.xlu0 %v148_v43  ;;  %304 = vadd.xlane.f32.xlu1 %v180_v51  ;;  %v2430_v43 = vld [vmem:[#allocation2 + $0xf8] sm:$0xff] }
  0x9f   :  { %3158 = vst [vmem:[#allocation25_spill] sm:$0xff] %v2430_v43  ;;  %v2432_v51 = vld [vmem:[#allocation2 + $0x1f8] sm:$0xff]  ;;  %v151_v59 = vmul.f32 %v2180_v3, %v2430_v43 }
  0xa0   :  { %v183_v54 = vmul.f32 %v2180_v3, %v2432_v51 }
  0xa2   :  { %242 = vadd.xlane.f32.xlu0 %v149_v7  ;;  %306 = vadd.xlane.f32.xlu1 %v181_v62 }
  0xa6   :  { %244 = vadd.xlane.f32.xlu0 %v150_v38  ;;  %308 = vadd.xlane.f32.xlu1 %v182_v27 }
  0xaa   :  { %246 = vadd.xlane.f32.xlu0 %v151_v59  ;;  %310 = vadd.xlane.f32.xlu1 %v183_v54 }
  0xbb   :  { %v185_v62 = vpop.xlane.xlu0 %184  ;;  %v187_v7 = vpop.xlane.xlu1 %186 }
  0xbc   :  { %v312_v11 = vmul.f32 0.03125, %v185_v62  ;;  %v313_v46 = vmul.f32 0.03125, %v187_v7 }
  0xbe   :  { %v376_v22 = vsub.f32 %v2182_v4, %v312_v11  ;;  %v377_v35 = vsub.f32 %v2184_v5, %v313_v46 }
  0xbf   :  { %v249_v30 = vpop.xlane.xlu0 %248  ;;  %v251_v19 = vpop.xlane.xlu1 %250 }
  0xc0   :  { %v344_v38 = vmul.f32 0.03125, %v249_v30  ;;  %v345_v27 = vmul.f32 0.03125, %v251_v19  ;;  %v2441_v14 = vmul.f32 %v2180_v3, %v376_v22  ;;  %v2444_v43 = vmul.f32 %v2180_v3, %v377_v35  ;;  %v1093_v22 = vld [vmem:[#allocation5 + $0x8] sm:$0xff] }
  0xc2   :  { %3159 = vst [vmem:[#allocation26_spill] sm:$0xff] %v2441_v14  ;;  %3160 = vst [vmem:[#allocation27_spill] sm:$0xff] %v2444_v43  ;;  %v408_v54 = vsub.f32 %v2186_v6, %v344_v38  ;;  %v409_v59 = vsub.f32 %v2192_v9, %v345_v27  ;;  %v504_v62 = vmul.f32 %v2441_v14, %v2441_v14  ;;  %v1092_v6 = vld [vmem:[#allocation5] sm:$0xff]  ;;  %v1094_v9 = vld [vmem:[#allocation5 + $0x10] sm:$0xff] }
  0xc3   :  { %v189_v4 = vpop.xlane.xlu0 %188  ;;  %v253_v11 = vpop.xlane.xlu1 %252  ;;  %v505_v5 = vmul.f32 %v2444_v43, %v2444_v43  ;;  %v1858_v7 = vpack.c.bf16 %v1093_v22, %v1092_v6  ;;  %v1095_v38 = vld [vmem:[#allocation5 + $0x18] sm:$0xff] }
  0xc4   :  { %v314_v30 = vmul.f32 0.03125, %v189_v4  ;;  %568 = vadd.xlane.f32.xlu0 %v504_v62  ;;  %v346_v19 = vmul.f32 0.03125, %v253_v11  ;;  %v2453_v46 = vmul.f32 %v2180_v3, %v408_v54  ;;  %v2456_v35 = vmul.f32 %v2180_v3, %v409_v59 }
  0xc5   :  { %1859 = vmatprep.subr.bf16.mxu0 %v1858_v7  ;;  %1890 = vmatprep.subr.bf16.mxu1 %v1858_v7  ;;  %v1862_v59 = vpack.c.bf16 %v1095_v38, %v1094_v9 }
  0xc6   :  { %v378_v27 = vsub.f32 %v2198_v12, %v314_v30  ;;  %v410_v14 = vsub.f32 %v2200_v13, %v346_v19  ;;  %v536_v4 = vmul.f32 %v2453_v46, %v2453_v46  ;;  %v537_v54 = vmul.f32 %v2456_v35, %v2456_v35  ;;  %1861 = vmatpush3.bf16.msra.mxu0 %v1858_v7 }
  0xc7   :  { %v191_v62 = vpop.xlane.xlu0 %190  ;;  %v255_v11 = vpop.xlane.xlu1 %254  ;;  %1898 = vmatpush3.bf16.msra.mxu1 %v1858_v7  ;;  %1863 = vmatprep.subr.bf16.mxu0 %v1862_v59 }
  0xc8   :  { %v315_v43 = vmul.f32 0.03125, %v191_v62  ;;  %570 = vadd.xlane.f32.xlu0 %v505_v5  ;;  %632 = vadd.xlane.f32.xlu1 %v536_v4  ;;  %v347_v6 = vmul.f32 0.03125, %v255_v11  ;;  %v2465_v22 = vmul.f32 %v2180_v3, %v378_v27  ;;  %v2468_v12 = vmul.f32 %v2180_v3, %v410_v14 }
  0xc9   :  { %1891 = vmatprep.subr.bf16.mxu1 %v1862_v59 }
  0xca   :  { %v379_v13 = vsub.f32 %v2206_v16, %v315_v43  ;;  %v411_v30 = vsub.f32 %v2208_v17, %v347_v6  ;;  %v506_v19 = vmul.f32 %v2465_v22, %v2465_v22  ;;  %v538_v38 = vmul.f32 %v2468_v12, %v2468_v12  ;;  %1865 = vmatpush3.bf16.msra.mxu0 %v1862_v59 }
  0xcb   :  { %v193_v9 = vpop.xlane.xlu0 %192  ;;  %v257_v5 = vpop.xlane.xlu1 %256  ;;  %1899 = vmatpush3.bf16.msra.mxu1 %v1862_v59 }
  0xcc   :  { %v316_v27 = vmul.f32 0.03125, %v193_v9  ;;  %634 = vadd.xlane.f32.xlu1 %v537_v54  ;;  %572 = vadd.xlane.f32.xlu0 %v506_v19  ;;  %v348_v14 = vmul.f32 0.03125, %v257_v5  ;;  %v2477_v7 = vmul.f32 %v2180_v3, %v379_v13  ;;  %v2480_v16 = vmul.f32 %v2180_v3, %v411_v30 }
  0xce   :  { %v380_v17 = vsub.f32 %v2214_v20, %v316_v27  ;;  %v412_v43 = vsub.f32 %v2216_v21, %v348_v14  ;;  %v507_v4 = vmul.f32 %v2477_v7, %v2477_v7  ;;  %v539_v54 = vmul.f32 %v2480_v16, %v2480_v16  ;;  %v1096_v20 = vld [vmem:[#allocation5 + $0x20] sm:$0xff]  ;;  %v1097_v21 = vld [vmem:[#allocation5 + $0x28] sm:$0xff] }
  0xcf   :  { %v195_v62 = vpop.xlane.xlu0 %194  ;;  %v259_v11 = vpop.xlane.xlu1 %258  ;;  %v1866_v19 = vpack.c.bf16 %v1097_v21, %v1096_v20 }
  0xd0   :  { %v317_v6 = vmul.f32 0.03125, %v195_v62  ;;  %636 = vadd.xlane.f32.xlu1 %v538_v38  ;;  %574 = vadd.xlane.f32.xlu0 %v507_v4  ;;  %v349_v13 = vmul.f32 0.03125, %v259_v11  ;;  %v2489_v30 = vmul.f32 %v2180_v3, %v380_v17  ;;  %v2492_v59 = vmul.f32 %v2180_v3, %v412_v43  ;;  %v1099_v11 = vld [vmem:[#allocation5 + $0x38] sm:$0xff] }
  0xd1   :  { %1867 = vmatprep.subr.bf16.mxu0 %v1866_v19  ;;  %1892 = vmatprep.subr.bf16.mxu1 %v1866_v19 }
  0xd2   :  { %v381_v9 = vsub.f32 %v2222_v24, %v317_v6  ;;  %v413_v5 = vsub.f32 %v2224_v25, %v349_v13  ;;  %v508_v27 = vmul.f32 %v2489_v30, %v2489_v30  ;;  %v540_v4 = vmul.f32 %v2492_v59, %v2492_v59  ;;  %1869 = vmatpush3.bf16.msra.mxu0 %v1866_v19  ;;  %v1098_v25 = vld [vmem:[#allocation5 + $0x30] sm:$0xff] }
  0xd3   :  { %v197_v14 = vpop.xlane.xlu0 %196  ;;  %v261_v38 = vpop.xlane.xlu1 %260  ;;  %1900 = vmatpush3.bf16.msra.mxu1 %v1866_v19  ;;  %v1101_v19 = vld [vmem:[#allocation5 + $0x48] sm:$0xff] }
  0xd4   :  { %v318_v17 = vmul.f32 0.03125, %v197_v14  ;;  %638 = vadd.xlane.f32.xlu1 %v539_v54  ;;  %576 = vadd.xlane.f32.xlu0 %v508_v27  ;;  %v350_v43 = vmul.f32 0.03125, %v261_v38  ;;  %v2501_v62 = vmul.f32 %v2180_v3, %v381_v9  ;;  %v2504_v24 = vmul.f32 %v2180_v3, %v413_v5 }
  0xd5   :  { %v1870_v27 = vpack.c.bf16 %v1099_v11, %v1098_v25 }
  0xd6   :  { %v382_v6 = vsub.f32 %v2230_v28, %v318_v17  ;;  %v414_v13 = vsub.f32 %v2232_v29, %v350_v43  ;;  %v509_v20 = vmul.f32 %v2501_v62, %v2501_v62  ;;  %v541_v9 = vmul.f32 %v2504_v24, %v2504_v24  ;;  %v1100_v29 = vld [vmem:[#allocation5 + $0x40] sm:$0xff] }
  0xd7   :  { %v199_v54 = vpop.xlane.xlu0 %198  ;;  %v263_v21 = vpop.xlane.xlu1 %262  ;;  %1871 = vmatprep.subr.bf16.mxu0 %v1870_v27  ;;  %1893 = vmatprep.subr.bf16.mxu1 %v1870_v27 }
  0xd8   :  { %v319_v14 = vmul.f32 0.03125, %v199_v54  ;;  %640 = vadd.xlane.f32.xlu1 %v540_v4  ;;  %578 = vadd.xlane.f32.xlu0 %v509_v20  ;;  %v351_v5 = vmul.f32 0.03125, %v263_v21  ;;  %v2513_v38 = vmul.f32 %v2180_v3, %v382_v6  ;;  %v2516_v28 = vmul.f32 %v2180_v3, %v414_v13 }
  0xd9   :  { %1873 = vmatpush3.bf16.msra.mxu0 %v1870_v27  ;;  %v1874_v20 = vpack.c.bf16 %v1101_v19, %v1100_v29  ;;  %1901 = vmatpush3.bf16.msra.mxu1 %v1870_v27 }
  0xda   :  { %3161 = vst [vmem:[#allocation28_spill] sm:$0xff] %v2516_v28  ;;  %v383_v17 = vsub.f32 %v2238_v32, %v319_v14  ;;  %v415_v43 = vsub.f32 %v2240_v33, %v351_v5  ;;  %v510_v25 = vmul.f32 %v2513_v38, %v2513_v38  ;;  %v542_v6 = vmul.f32 %v2516_v28, %v2516_v28  ;;  %v1102_v33 = vld [vmem:[#allocation5 + $0x50] sm:$0xff]  ;;  %v1103_v14 = vld [vmem:[#allocation5 + $0x58] sm:$0xff] }
  0xdb   :  { %v201_v4 = vpop.xlane.xlu0 %200  ;;  %v265_v11 = vpop.xlane.xlu1 %264  ;;  %1875 = vmatprep.subr.bf16.mxu0 %v1874_v20  ;;  %1894 = vmatprep.subr.bf16.mxu1 %v1874_v20 }
  0xdc   :  { %v320_v13 = vmul.f32 0.03125, %v201_v4  ;;  %642 = vadd.xlane.f32.xlu1 %v541_v9  ;;  %580 = vadd.xlane.f32.xlu0 %v510_v25  ;;  %v352_v54 = vmul.f32 0.03125, %v265_v11  ;;  %v2525_v21 = vmul.f32 %v2180_v3, %v383_v17  ;;  %v2528_v32 = vmul.f32 %v2180_v3, %v415_v43  ;;  %v1105_v11 = vld [vmem:[#allocation5 + $0x68] sm:$0xff] }
  0xdd   :  { %1877 = vmatpush3.bf16.msra.mxu0 %v1874_v20  ;;  %v1878_v17 = vpack.c.bf16 %v1103_v14, %v1102_v33  ;;  %1902 = vmatpush3.bf16.msra.mxu1 %v1874_v20 }
  0xde   :  { %v384_v5 = vsub.f32 %v2246_v36, %v320_v13  ;;  %v416_v28 = vsub.f32 %v2248_v37, %v352_v54  ;;  %v511_v27 = vmul.f32 %v2525_v21, %v2525_v21  ;;  %v543_v19 = vmul.f32 %v2528_v32, %v2528_v32  ;;  %v1104_v37 = vld [vmem:[#allocation5 + $0x60] sm:$0xff] }
  0xdf   :  { %v203_v9 = vpop.xlane.xlu0 %202  ;;  %v267_v29 = vpop.xlane.xlu1 %266  ;;  %1879 = vmatprep.subr.bf16.mxu0 %v1878_v17  ;;  %1895 = vmatprep.subr.bf16.mxu1 %v1878_v17 }
  0xe0   :  { %v321_v43 = vmul.f32 0.03125, %v203_v9  ;;  %644 = vadd.xlane.f32.xlu1 %v542_v6  ;;  %582 = vadd.xlane.f32.xlu0 %v511_v27  ;;  %v353_v25 = vmul.f32 0.03125, %v267_v29  ;;  %v2537_v4 = vmul.f32 %v2180_v3, %v384_v5  ;;  %v2540_v36 = vmul.f32 %v2180_v3, %v416_v28  ;;  %v1107_v29 = vld [vmem:[#allocation5 + $0x78] sm:$0xff] }
  0xe1   :  { %1881 = vmatpush3.bf16.msra.mxu0 %v1878_v17  ;;  %v1882_v5 = vpack.c.bf16 %v1105_v11, %v1104_v37  ;;  %1903 = vmatpush3.bf16.msra.mxu1 %v1878_v17 }
  0xe2   :  { %v385_v13 = vsub.f32 %v2254_v40, %v321_v43  ;;  %v417_v54 = vsub.f32 %v2256_v41, %v353_v25  ;;  %v512_v20 = vmul.f32 %v2537_v4, %v2537_v4  ;;  %v544_v14 = vmul.f32 %v2540_v36, %v2540_v36  ;;  %v1106_v41 = vld [vmem:[#allocation5 + $0x70] sm:$0xff] }
  0xe3   :  { %v205_v6 = vpop.xlane.xlu0 %204  ;;  %v269_v33 = vpop.xlane.xlu1 %268  ;;  %1883 = vmatprep.subr.bf16.mxu0 %v1882_v5  ;;  %1896 = vmatprep.subr.bf16.mxu1 %v1882_v5 }
  0xe4   :  { %v322_v28 = vmul.f32 0.03125, %v205_v6  ;;  %646 = vadd.xlane.f32.xlu1 %v543_v19  ;;  %584 = vadd.xlane.f32.xlu0 %v512_v20  ;;  %v354_v27 = vmul.f32 0.03125, %v269_v33  ;;  %v2549_v9 = vmul.f32 %v2180_v3, %v385_v13  ;;  %v2552_v40 = vmul.f32 %v2180_v3, %v417_v54 }
  0xe5   :  { %1885 = vmatpush3.bf16.msra.mxu0 %v1882_v5  ;;  %v1886_v13 = vpack.c.bf16 %v1107_v29, %v1106_v41  ;;  %1904 = vmatpush3.bf16.msra.mxu1 %v1882_v5 }
  0xe6   :  { %v386_v43 = vsub.f32 %v2262_v44, %v322_v28  ;;  %v418_v25 = vsub.f32 %v2264_v45, %v354_v27  ;;  %v513_v17 = vmul.f32 %v2549_v9, %v2549_v9  ;;  %v545_v11 = vmul.f32 %v2552_v40, %v2552_v40 }
  0xe7   :  { %v207_v19 = vpop.xlane.xlu0 %206  ;;  %v271_v37 = vpop.xlane.xlu1 %270  ;;  %1887 = vmatprep.subr.bf16.mxu0 %v1886_v13  ;;  %1897 = vmatprep.subr.bf16.mxu1 %v1886_v13 }
  0xe8   :  { %v323_v54 = vmul.f32 0.03125, %v207_v19  ;;  %648 = vadd.xlane.f32.xlu1 %v544_v14  ;;  %586 = vadd.xlane.f32.xlu0 %v513_v17  ;;  %v355_v20 = vmul.f32 0.03125, %v271_v37  ;;  %v2561_v6 = vmul.f32 %v2180_v3, %v386_v43  ;;  %v2564_v44 = vmul.f32 %v2180_v3, %v418_v25 }
  0xe9   :  { %1889 = vmatpush3.bf16.msra.mxu0 %v1886_v13  ;;  %1905 = vmatpush3.bf16.msra.mxu1 %v1886_v13 }
  0xea   :  { %v387_v45 = vsub.f32 %v2270_v48, %v323_v54  ;;  %v419_v33 = vsub.f32 %v2272_v49, %v355_v20  ;;  %v514_v28 = vmul.f32 %v2561_v6, %v2561_v6  ;;  %v546_v27 = vmul.f32 %v2564_v44, %v2564_v44 }
  0xeb   :  { %v209_v5 = vpop.xlane.xlu0 %208  ;;  %v273_v14 = vpop.xlane.xlu1 %272 }
  0xec   :  { %v324_v41 = vmul.f32 0.03125, %v209_v5  ;;  %650 = vadd.xlane.f32.xlu1 %v545_v11  ;;  %588 = vadd.xlane.f32.xlu0 %v514_v28  ;;  %v356_v29 = vmul.f32 0.03125, %v273_v14  ;;  %v2573_v43 = vmul.f32 %v2180_v3, %v387_v45  ;;  %v2576_v48 = vmul.f32 %v2180_v3, %v419_v33 }
  0xee   :  { %v388_v49 = vsub.f32 %v2278_v52, %v324_v41  ;;  %v420_v25 = vsub.f32 %v2280_v53, %v356_v29  ;;  %v515_v17 = vmul.f32 %v2573_v43, %v2573_v43  ;;  %v547_v11 = vmul.f32 %v2576_v48, %v2576_v48 }
  0xef   :  { %v211_v19 = vpop.xlane.xlu0 %210  ;;  %v275_v37 = vpop.xlane.xlu1 %274 }
  0xf0   :  { %v325_v13 = vmul.f32 0.03125, %v211_v19  ;;  %652 = vadd.xlane.f32.xlu1 %v546_v27  ;;  %590 = vadd.xlane.f32.xlu0 %v515_v17  ;;  %v357_v54 = vmul.f32 0.03125, %v275_v37  ;;  %v2585_v20 = vmul.f32 %v2180_v3, %v388_v49  ;;  %v2588_v45 = vmul.f32 %v2180_v3, %v420_v25 }
  0xf2   :  { %v389_v52 = vsub.f32 %v2286_v56, %v325_v13  ;;  %v421_v53 = vsub.f32 %v2288_v57, %v357_v54  ;;  %v516_v33 = vmul.f32 %v2585_v20, %v2585_v20  ;;  %v548_v14 = vmul.f32 %v2588_v45, %v2588_v45 }
  0xf3   :  { %v213_v28 = vpop.xlane.xlu0 %212  ;;  %v277_v5 = vpop.xlane.xlu1 %276 }
  0xf4   :  { %v326_v27 = vmul.f32 0.03125, %v213_v28  ;;  %654 = vadd.xlane.f32.xlu1 %v547_v11  ;;  %592 = vadd.xlane.f32.xlu0 %v516_v33  ;;  %v358_v41 = vmul.f32 0.03125, %v277_v5  ;;  %v2597_v29 = vmul.f32 %v2180_v3, %v389_v52  ;;  %v2600_v49 = vmul.f32 %v2180_v3, %v421_v53 }
  0xf6   :  { %v390_v56 = vsub.f32 %v2294_v60, %v326_v27  ;;  %v422_v57 = vsub.f32 %v2296_v61, %v358_v41  ;;  %v517_v25 = vmul.f32 %v2597_v29, %v2597_v29  ;;  %v549_v37 = vmul.f32 %v2600_v49, %v2600_v49 }
  0xf7   :  { %v215_v17 = vpop.xlane.xlu0 %214  ;;  %v279_v19 = vpop.xlane.xlu1 %278 }
  0xf8   :  { %v327_v11 = vmul.f32 0.03125, %v215_v17  ;;  %656 = vadd.xlane.f32.xlu1 %v548_v14  ;;  %594 = vadd.xlane.f32.xlu0 %v517_v25  ;;  %v359_v13 = vmul.f32 0.03125, %v279_v19  ;;  %v2609_v54 = vmul.f32 %v2180_v3, %v390_v56  ;;  %v2612_v52 = vmul.f32 %v2180_v3, %v422_v57 }
  0xfa   :  { %v391_v60 = vsub.f32 %v2302_v0, %v327_v11  ;;  %v423_v61 = vsub.f32 %v2304_v1, %v359_v13  ;;  %v518_v53 = vmul.f32 %v2609_v54, %v2609_v54  ;;  %v550_v5 = vmul.f32 %v2612_v52, %v2612_v52 }
  0xfb   :  { %v217_v33 = vpop.xlane.xlu0 %216  ;;  %v281_v28 = vpop.xlane.xlu1 %280 }
  0xfc   :  { %v328_v14 = vmul.f32 0.03125, %v217_v33  ;;  %658 = vadd.xlane.f32.xlu1 %v549_v37  ;;  %596 = vadd.xlane.f32.xlu0 %v518_v53  ;;  %v360_v27 = vmul.f32 0.03125, %v281_v28  ;;  %v2621_v41 = vmul.f32 %v2180_v3, %v391_v60  ;;  %v2624_v56 = vmul.f32 %v2180_v3, %v423_v61 }
  0xfe   :  { %v392_v0 = vsub.f32 %v2310_v8, %v328_v14  ;;  %v424_v1 = vsub.f32 %v2312_v10, %v360_v27  ;;  %v519_v57 = vmul.f32 %v2621_v41, %v2621_v41  ;;  %v551_v19 = vmul.f32 %v2624_v56, %v2624_v56 }
  0xff   :  { %v219_v25 = vpop.xlane.xlu0 %218  ;;  %v283_v17 = vpop.xlane.xlu1 %282 }
 0x100   :  { %v329_v37 = vmul.f32 0.03125, %v219_v25  ;;  %660 = vadd.xlane.f32.xlu1 %v550_v5  ;;  %598 = vadd.xlane.f32.xlu0 %v519_v57  ;;  %v361_v11 = vmul.f32 0.03125, %v283_v17  ;;  %v2633_v13 = vmul.f32 %v2180_v3, %v392_v0  ;;  %v2636_v60 = vmul.f32 %v2180_v3, %v424_v1 }
 0x102   :  { %v393_v8 = vsub.f32 %v2318_v15, %v329_v37  ;;  %v425_v10 = vsub.f32 %v2320_v18, %v361_v11  ;;  %v520_v61 = vmul.f32 %v2633_v13, %v2633_v13  ;;  %v552_v28 = vmul.f32 %v2636_v60, %v2636_v60 }
 0x103   :  { %v221_v53 = vpop.xlane.xlu0 %220  ;;  %v285_v33 = vpop.xlane.xlu1 %284 }
 0x104   :  { %v2645_v5 = vmul.f32 %v2180_v3, %v393_v8  ;;  %v2648_v14 = vmul.f32 %v2180_v3, %v425_v10  ;;  %v330_v27 = vmul.f32 0.03125, %v221_v53  ;;  %662 = vadd.xlane.f32.xlu1 %v551_v19  ;;  %600 = vadd.xlane.f32.xlu0 %v520_v61  ;;  %v362_v15 = vmul.f32 0.03125, %v285_v33 }
 0x106   :  { %v394_v18 = vsub.f32 %v2326_v23, %v330_v27  ;;  %v426_v0 = vsub.f32 %v2328_v26, %v362_v15  ;;  %v521_v1 = vmul.f32 %v2645_v5, %v2645_v5  ;;  %v553_v17 = vmul.f32 %v2648_v14, %v2648_v14 }
 0x107   :  { %v223_v57 = vpop.xlane.xlu0 %222  ;;  %v287_v25 = vpop.xlane.xlu1 %286 }
 0x108   :  { %v2657_v37 = vmul.f32 %v2180_v3, %v394_v18  ;;  %v2660_v11 = vmul.f32 %v2180_v3, %v426_v0  ;;  %v331_v19 = vmul.f32 0.03125, %v223_v57  ;;  %664 = vadd.xlane.f32.xlu1 %v552_v28  ;;  %602 = vadd.xlane.f32.xlu0 %v521_v1  ;;  %v363_v23 = vmul.f32 0.03125, %v287_v25 }
 0x10a   :  { %v395_v26 = vsub.f32 %v2334_v31, %v331_v19  ;;  %v427_v8 = vsub.f32 %v2336_v34, %v363_v23  ;;  %v522_v10 = vmul.f32 %v2657_v37, %v2657_v37  ;;  %v554_v33 = vmul.f32 %v2660_v11, %v2660_v11 }
 0x10b   :  { %v225_v61 = vpop.xlane.xlu0 %224  ;;  %v289_v53 = vpop.xlane.xlu1 %288 }
 0x10c   :  { %v2669_v27 = vmul.f32 %v2180_v3, %v395_v26  ;;  %v2672_v15 = vmul.f32 %v2180_v3, %v427_v8  ;;  %v332_v28 = vmul.f32 0.03125, %v225_v61  ;;  %666 = vadd.xlane.f32.xlu1 %v553_v17  ;;  %604 = vadd.xlane.f32.xlu0 %v522_v10  ;;  %v364_v31 = vmul.f32 0.03125, %v289_v53 }
 0x10e   :  { %v396_v34 = vsub.f32 %v2342_v39, %v332_v28  ;;  %v428_v18 = vsub.f32 %v2344_v42, %v364_v31  ;;  %v523_v0 = vmul.f32 %v2669_v27, %v2669_v27  ;;  %v555_v25 = vmul.f32 %v2672_v15, %v2672_v15 }
 0x10f   :  { %v227_v1 = vpop.xlane.xlu0 %226  ;;  %v291_v57 = vpop.xlane.xlu1 %290 }
 0x110   :  { %v2681_v19 = vmul.f32 %v2180_v3, %v396_v34  ;;  %v2684_v23 = vmul.f32 %v2180_v3, %v428_v18  ;;  %v333_v17 = vmul.f32 0.03125, %v227_v1  ;;  %668 = vadd.xlane.f32.xlu1 %v554_v33  ;;  %606 = vadd.xlane.f32.xlu0 %v523_v0  ;;  %v365_v39 = vmul.f32 0.03125, %v291_v57 }
 0x112   :  { %v397_v42 = vsub.f32 %v2350_v47, %v333_v17  ;;  %v429_v26 = vsub.f32 %v2352_v50, %v365_v39  ;;  %v524_v8 = vmul.f32 %v2681_v19, %v2681_v19  ;;  %v556_v53 = vmul.f32 %v2684_v23, %v2684_v23 }
 0x113   :  { %v229_v10 = vpop.xlane.xlu0 %228  ;;  %v293_v61 = vpop.xlane.xlu1 %292 }
 0x114   :  { %v2693_v28 = vmul.f32 %v2180_v3, %v397_v42  ;;  %v2696_v31 = vmul.f32 %v2180_v3, %v429_v26  ;;  %v334_v33 = vmul.f32 0.03125, %v229_v10  ;;  %670 = vadd.xlane.f32.xlu1 %v555_v25  ;;  %608 = vadd.xlane.f32.xlu0 %v524_v8  ;;  %v366_v47 = vmul.f32 0.03125, %v293_v61 }
 0x116   :  { %v398_v50 = vsub.f32 %v2358_v55, %v334_v33  ;;  %v430_v34 = vsub.f32 %v2360_v58, %v366_v47  ;;  %v525_v18 = vmul.f32 %v2693_v28, %v2693_v28  ;;  %v557_v57 = vmul.f32 %v2696_v31, %v2696_v31 }
 0x117   :  { %v231_v0 = vpop.xlane.xlu0 %230  ;;  %v295_v1 = vpop.xlane.xlu1 %294 }
 0x118   :  { %v2705_v17 = vmul.f32 %v2180_v3, %v398_v50  ;;  %v2708_v39 = vmul.f32 %v2180_v3, %v430_v34  ;;  %v335_v25 = vmul.f32 0.03125, %v231_v0  ;;  %672 = vadd.xlane.f32.xlu1 %v556_v53  ;;  %610 = vadd.xlane.f32.xlu0 %v525_v18  ;;  %v367_v55 = vmul.f32 0.03125, %v295_v1  ;;  %v3166_v50 = vld [vmem:[#allocation11_spill] sm:$0xff]  ;;  %v3167_v34 = vld [vmem:[#allocation12_spill] sm:$0xff] }
 0x11a   :  { %3162 = vst [vmem:[#allocation29_spill] sm:$0xff] %v2705_v17  ;;  %3163 = vst [vmem:[#allocation30_spill] sm:$0xff] %v2708_v39  ;;  %v399_v58 = vsub.f32 %v2366_v63, %v335_v25  ;;  %v431_v42 = vsub.f32 %v2368_v2, %v367_v55  ;;  %v526_v26 = vmul.f32 %v2705_v17, %v2705_v17 }
 0x11b   :  { %v233_v8 = vpop.xlane.xlu0 %232  ;;  %v297_v10 = vpop.xlane.xlu1 %296  ;;  %v558_v61 = vmul.f32 %v2708_v39, %v2708_v39 }
 0x11c   :  { %v2717_v33 = vmul.f32 %v2180_v3, %v399_v58  ;;  %v2720_v47 = vmul.f32 %v2180_v3, %v431_v42  ;;  %v336_v53 = vmul.f32 0.03125, %v233_v8  ;;  %674 = vadd.xlane.f32.xlu1 %v557_v57  ;;  %612 = vadd.xlane.f32.xlu0 %v526_v26  ;;  %v368_v63 = vmul.f32 0.03125, %v297_v10  ;;  %v3170_v8 = vld [vmem:[#allocation13_spill] sm:$0xff] }
 0x11e   :  { %3164 = vst [vmem:[#allocation31_spill] sm:$0xff] %v2717_v33  ;;  %3165 = vst [vmem:[#allocation32_spill] sm:$0xff] %v2720_v47  ;;  %v400_v2 = vsub.f32 %v3166_v50, %v336_v53  ;;  %v432_v18 = vsub.f32 %v3167_v34, %v368_v63  ;;  %v527_v0 = vmul.f32 %v2717_v33, %v2717_v33  ;;  %v3171_v53 = vld [vmem:[#allocation14_spill] sm:$0xff] }
 0x11f   :  { %v235_v1 = vpop.xlane.xlu0 %234  ;;  %v299_v25 = vpop.xlane.xlu1 %298  ;;  %v559_v55 = vmul.f32 %v2720_v47, %v2720_v47 }
 0x120   :  { %v2729_v58 = vmul.f32 %v2180_v3, %v400_v2  ;;  %v2732_v42 = vmul.f32 %v2180_v3, %v432_v18  ;;  %v337_v57 = vmul.f32 0.03125, %v235_v1  ;;  %676 = vadd.xlane.f32.xlu1 %v558_v61  ;;  %614 = vadd.xlane.f32.xlu0 %v527_v0  ;;  %v369_v26 = vmul.f32 0.03125, %v299_v25  ;;  %v3174_v1 = vld [vmem:[#allocation15_spill] sm:$0xff] }
 0x122   :  { %3168 = vst [vmem:[#allocation11_spill] sm:$0xff] %v2729_v58  ;;  %3169 = vst [vmem:[#allocation12_spill] sm:$0xff] %v2732_v42  ;;  %v401_v10 = vsub.f32 %v3170_v8, %v337_v57  ;;  %v433_v63 = vsub.f32 %v3171_v53, %v369_v26  ;;  %v528_v50 = vmul.f32 %v2729_v58, %v2729_v58  ;;  %v3175_v57 = vld [vmem:[#allocation16_spill] sm:$0xff] }
 0x123   :  { %v237_v34 = vpop.xlane.xlu0 %236  ;;  %v301_v33 = vpop.xlane.xlu1 %300  ;;  %v560_v2 = vmul.f32 %v2732_v42, %v2732_v42 }
 0x124   :  { %v2741_v47 = vmul.f32 %v2180_v3, %v401_v10  ;;  %v2744_v18 = vmul.f32 %v2180_v3, %v433_v63  ;;  %v338_v61 = vmul.f32 0.03125, %v237_v34  ;;  %678 = vadd.xlane.f32.xlu1 %v559_v55  ;;  %616 = vadd.xlane.f32.xlu0 %v528_v50  ;;  %v370_v0 = vmul.f32 0.03125, %v301_v33  ;;  %v3178_v50 = vld [vmem:[#allocation17_spill] sm:$0xff] }
 0x126   :  { %3172 = vst [vmem:[#allocation13_spill] sm:$0xff] %v2741_v47  ;;  %3173 = vst [vmem:[#allocation14_spill] sm:$0xff] %v2744_v18  ;;  %v402_v25 = vsub.f32 %v3174_v1, %v338_v61  ;;  %v434_v26 = vsub.f32 %v3175_v57, %v370_v0  ;;  %v529_v8 = vmul.f32 %v2741_v47, %v2741_v47  ;;  %v3179_v61 = vld [vmem:[#allocation18_spill] sm:$0xff] }
 0x127   :  { %v239_v53 = vpop.xlane.xlu0 %238  ;;  %v303_v58 = vpop.xlane.xlu1 %302  ;;  %v561_v10 = vmul.f32 %v2744_v18, %v2744_v18 }
 0x128   :  { %v2753_v42 = vmul.f32 %v2180_v3, %v402_v25  ;;  %v2756_v63 = vmul.f32 %v2180_v3, %v434_v26  ;;  %v339_v55 = vmul.f32 0.03125, %v239_v53  ;;  %680 = vadd.xlane.f32.xlu1 %v560_v2  ;;  %618 = vadd.xlane.f32.xlu0 %v529_v8  ;;  %v371_v33 = vmul.f32 0.03125, %v303_v58  ;;  %v3182_v8 = vld [vmem:[#allocation19_spill] sm:$0xff] }
 0x12a   :  { %3176 = vst [vmem:[#allocation15_spill] sm:$0xff] %v2753_v42  ;;  %3177 = vst [vmem:[#allocation16_spill] sm:$0xff] %v2756_v63  ;;  %v403_v34 = vsub.f32 %v3178_v50, %v339_v55  ;;  %v435_v0 = vsub.f32 %v3179_v61, %v371_v33  ;;  %v530_v1 = vmul.f32 %v2753_v42, %v2753_v42  ;;  %v3183_v55 = vld [vmem:[#allocation20_spill] sm:$0xff] }
 0x12b   :  { %v241_v57 = vpop.xlane.xlu0 %240  ;;  %v305_v47 = vpop.xlane.xlu1 %304  ;;  %v562_v25 = vmul.f32 %v2756_v63, %v2756_v63 }
 0x12c   :  { %v2765_v18 = vmul.f32 %v2180_v3, %v403_v34  ;;  %v2768_v26 = vmul.f32 %v2180_v3, %v435_v0  ;;  %v340_v2 = vmul.f32 0.03125, %v241_v57  ;;  %682 = vadd.xlane.f32.xlu1 %v561_v10  ;;  %620 = vadd.xlane.f32.xlu0 %v530_v1  ;;  %v372_v58 = vmul.f32 0.03125, %v305_v47  ;;  %v3186_v1 = vld [vmem:[#allocation21_spill] sm:$0xff] }
 0x12e   :  { %3180 = vst [vmem:[#allocation17_spill] sm:$0xff] %v2765_v18  ;;  %3181 = vst [vmem:[#allocation18_spill] sm:$0xff] %v2768_v26  ;;  %v404_v53 = vsub.f32 %v3182_v8, %v340_v2  ;;  %v436_v33 = vsub.f32 %v3183_v55, %v372_v58  ;;  %v531_v50 = vmul.f32 %v2765_v18, %v2765_v18  ;;  %v3187_v2 = vld [vmem:[#allocation22_spill] sm:$0xff] }
 0x12f   :  { %v243_v61 = vpop.xlane.xlu0 %242  ;;  %v307_v42 = vpop.xlane.xlu1 %306  ;;  %v563_v34 = vmul.f32 %v2768_v26, %v2768_v26 }
 0x130   :  { %v2777_v63 = vmul.f32 %v2180_v3, %v404_v53  ;;  %v2780_v0 = vmul.f32 %v2180_v3, %v436_v33  ;;  %v341_v10 = vmul.f32 0.03125, %v243_v61  ;;  %684 = vadd.xlane.f32.xlu1 %v562_v25  ;;  %622 = vadd.xlane.f32.xlu0 %v531_v50  ;;  %v373_v47 = vmul.f32 0.03125, %v307_v42  ;;  %v3190_v50 = vld [vmem:[#allocation23_spill] sm:$0xff] }
 0x132   :  { %3184 = vst [vmem:[#allocation19_spill] sm:$0xff] %v2777_v63  ;;  %3185 = vst [vmem:[#allocation20_spill] sm:$0xff] %v2780_v0  ;;  %v405_v57 = vsub.f32 %v3186_v1, %v341_v10  ;;  %v437_v58 = vsub.f32 %v3187_v2, %v373_v47  ;;  %v532_v8 = vmul.f32 %v2777_v63, %v2777_v63  ;;  %v3191_v10 = vld [vmem:[#allocation24_spill] sm:$0xff] }
 0x133   :  { %v245_v55 = vpop.xlane.xlu0 %244  ;;  %v309_v18 = vpop.xlane.xlu1 %308  ;;  %v564_v53 = vmul.f32 %v2780_v0, %v2780_v0 }
 0x134   :  { %v2789_v26 = vmul.f32 %v2180_v3, %v405_v57  ;;  %v2792_v33 = vmul.f32 %v2180_v3, %v437_v58  ;;  %v342_v25 = vmul.f32 0.03125, %v245_v55  ;;  %686 = vadd.xlane.f32.xlu1 %v563_v34  ;;  %624 = vadd.xlane.f32.xlu0 %v532_v8  ;;  %v374_v42 = vmul.f32 0.03125, %v309_v18  ;;  %v3194_v8 = vld [vmem:[#allocation25_spill] sm:$0xff] }
 0x136   :  { %3188 = vst [vmem:[#allocation21_spill] sm:$0xff] %v2789_v26  ;;  %3189 = vst [vmem:[#allocation22_spill] sm:$0xff] %v2792_v33  ;;  %v406_v61 = vsub.f32 %v3190_v50, %v342_v25  ;;  %v438_v47 = vsub.f32 %v3191_v10, %v374_v42  ;;  %v533_v1 = vmul.f32 %v2789_v26, %v2789_v26 }
 0x137   :  { %v247_v2 = vpop.xlane.xlu0 %246  ;;  %v311_v63 = vpop.xlane.xlu1 %310  ;;  %v565_v57 = vmul.f32 %v2792_v33, %v2792_v33 }
 0x138   :  { %v2801_v0 = vmul.f32 %v2180_v3, %v406_v61  ;;  %v2804_v58 = vmul.f32 %v2180_v3, %v438_v47  ;;  %v343_v34 = vmul.f32 0.03125, %v247_v2  ;;  %688 = vadd.xlane.f32.xlu1 %v564_v53  ;;  %626 = vadd.xlane.f32.xlu0 %v533_v1  ;;  %v375_v18 = vmul.f32 0.03125, %v311_v63 }
 0x13a   :  { %3192 = vst [vmem:[#allocation23_spill] sm:$0xff] %v2801_v0  ;;  %3193 = vst [vmem:[#allocation24_spill] sm:$0xff] %v2804_v58  ;;  %v407_v55 = vsub.f32 %v3194_v8, %v343_v34  ;;  %v439_v25 = vsub.f32 %v2432_v51, %v375_v18  ;;  %v534_v42 = vmul.f32 %v2801_v0, %v2801_v0 }
 0x13b   :  { %v566_v53 = vmul.f32 %v2804_v58, %v2804_v58 }
 0x13c   :  { %v2811_v50 = vmul.f32 %v2180_v3, %v407_v55  ;;  %v2814_v61 = vmul.f32 %v2180_v3, %v439_v25  ;;  %690 = vadd.xlane.f32.xlu1 %v565_v57  ;;  %628 = vadd.xlane.f32.xlu0 %v534_v42 }
 0x13e   :  { %3195 = vst [vmem:[#allocation25_spill] sm:$0xff] %v2811_v50  ;;  %3196 = vst [vmem:[#allocation33_spill] sm:$0xff] %v2814_v61  ;;  %v535_v63 = vmul.f32 %v2811_v50, %v2811_v50  ;;  %v567_v51 = vmul.f32 %v2814_v61, %v2814_v61 }
 0x140   :  { %692 = vadd.xlane.f32.xlu1 %v566_v53  ;;  %630 = vadd.xlane.f32.xlu0 %v535_v63 }
 0x144   :  { %694 = vadd.xlane.f32.xlu1 %v567_v51 }
 0x151   :  { %v569_v10 = vpop.xlane.xlu0 %568 }
 0x152   :  { %v696_v47 = vmul.f32 0.03125, %v569_v10 }
 0x154   :  { %v760_v1 = vadd.f32 1e-05, %v696_v47 }
 0x155   :  { %v633_v2 = vpop.xlane.xlu1 %632  ;;  %v571_v3 = vpop.xlane.xlu0 %570 }
 0x156   :  { %1912 = vrsqrt.f32 %v760_v1  ;;  %v728_v57 = vmul.f32 0.03125, %v633_v2  ;;  %v697_v34 = vmul.f32 0.03125, %v571_v3  ;;  %v2825_v3 = vld [vmem:[%s3101_s1] ss:$0 sm:$0xff] }
 0x158   :  { %v792_v18 = vadd.f32 1e-05, %v728_v57  ;;  %v761_v8 = vadd.f32 1e-05, %v697_v34 }
 0x159   :  { %v635_v55 = vpop.xlane.xlu1 %634  ;;  %v573_v25 = vpop.xlane.xlu0 %572 }
 0x15a   :  { %1914 = vrsqrt.f32 %v792_v18  ;;  %v729_v42 = vmul.f32 0.03125, %v635_v55  ;;  %v698_v53 = vmul.f32 0.03125, %v573_v25  ;;  %v3197_v18 = vld [vmem:[#allocation26_spill] sm:$0xff] }
 0x15b   :  { %1916 = vrsqrt.f32 %v761_v8 }
 0x15c   :  { %v793_v63 = vadd.f32 1e-05, %v729_v42  ;;  %v762_v50 = vadd.f32 1e-05, %v698_v53 }
 0x15d   :  { %v637_v61 = vpop.xlane.xlu1 %636  ;;  %v575_v51 = vpop.xlane.xlu0 %574 }
 0x15e   :  { %1918 = vrsqrt.f32 %v793_v63  ;;  %v730_v10 = vmul.f32 0.03125, %v637_v61  ;;  %v699_v47 = vmul.f32 0.03125, %v575_v51  ;;  %v2831_v61 = vld [vmem:[%s3102_s2] ss:$0 sm:$0xff] }
 0x15f   :  { %1920 = vrsqrt.f32 %v762_v50 }
 0x160   :  { %v1913_v58 = vpop.eup %1912  ;;  %v794_v1 = vadd.f32 1e-05, %v730_v10  ;;  %v763_v2 = vadd.f32 1e-05, %v699_v47 }
 0x161   :  { %v639_v57 = vpop.xlane.xlu1 %638  ;;  %v577_v34 = vpop.xlane.xlu0 %576  ;;  %v888_v8 = vmul.f32 %v1913_v58, %v3197_v18 }
 0x162   :  { %1922 = vrsqrt.f32 %v794_v1  ;;  %v731_v55 = vmul.f32 0.03125, %v639_v57  ;;  %v700_v25 = vmul.f32 0.03125, %v577_v34  ;;  %v3198_v34 = vld [vmem:[#allocation27_spill] sm:$0xff] }
 0x163   :  { %1924 = vrsqrt.f32 %v763_v2  ;;  %v958_v50 = vmul.f32 %v2825_v3, %v888_v8 }
 0x164   :  { %v1915_v42 = vpop.eup %1914  ;;  %v795_v53 = vadd.f32 1e-05, %v731_v55  ;;  %v764_v63 = vadd.f32 1e-05, %v700_v25 }
 0x165   :  { %v1917_v51 = vpop.eup %1916  ;;  %v641_v10 = vpop.xlane.xlu1 %640  ;;  %v1028_v0 = vadd.f32 %v2831_v61, %v958_v50  ;;  %v920_v58 = vmul.f32 %v1915_v42, %v2453_v46 }
 0x166   :  { %v579_v47 = vpop.xlane.xlu0 %578  ;;  %1926 = vrsqrt.f32 %v795_v53  ;;  %v732_v1 = vmul.f32 0.03125, %v641_v10  ;;  %v889_v18 = vmul.f32 %v1917_v51, %v3198_v34 }
 0x167   :  { %v701_v57 = vmul.f32 0.03125, %v579_v47  ;;  %1928 = vrsqrt.f32 %v764_v63  ;;  %1762 = vmatprep.mubr.f32.mxu0 %v1028_v0  ;;  %v990_v2 = vmul.f32 %v2825_v3, %v920_v58 }
 0x168   :  { %v1919_v8 = vpop.eup %1918  ;;  %v796_v33 = vadd.f32 1e-05, %v732_v1  ;;  %v959_v25 = vmul.f32 %v2825_v3, %v889_v18 }
 0x169   :  { %v765_v55 = vadd.f32 1e-05, %v701_v57  ;;  %v1921_v26 = vpop.eup %1920  ;;  %v643_v39 = vpop.xlane.xlu1 %642  ;;  %v1060_v50 = vadd.f32 %v2831_v61, %v990_v2  ;;  %v921_v46 = vmul.f32 %v1919_v8, %v2456_v35 }
 0x16a   :  { %v581_v17 = vpop.xlane.xlu0 %580  ;;  %1930 = vrsqrt.f32 %v796_v33  ;;  %v733_v42 = vmul.f32 0.03125, %v643_v39  ;;  %v1029_v63 = vadd.f32 %v2831_v61, %v959_v25  ;;  %v890_v0 = vmul.f32 %v1921_v26, %v2465_v22 }
 0x16b   :  { %v702_v53 = vmul.f32 0.03125, %v581_v17  ;;  %1932 = vrsqrt.f32 %v765_v55  ;;  %1810 = vmatprep.mubr.f32.mxu1 %v1060_v50  ;;  %v991_v51 = vmul.f32 %v2825_v3, %v921_v46 }
 0x16c   :  { %v1923_v10 = vpop.eup %1922  ;;  %v797_v47 = vadd.f32 1e-05, %v733_v42  ;;  %1763 = vmatmul.mubr.f32.vlgmr.msra.gmra.mrb[0].mxu0 %v1029_v63  ;;  %v960_v35 = vmul.f32 %v2825_v3, %v890_v0 }
 0x16d   :  { %v766_v58 = vadd.f32 1e-05, %v702_v53  ;;  %v1925_v1 = vpop.eup %1924  ;;  %v645_v57 = vpop.xlane.xlu1 %644  ;;  %v1061_v39 = vadd.f32 %v2831_v61, %v991_v51  ;;  %v922_v17 = vmul.f32 %v1923_v10, %v2468_v12 }
 0x16e   :  { %v583_v34 = vpop.xlane.xlu0 %582  ;;  %1934 = vrsqrt.f32 %v797_v47  ;;  %v734_v33 = vmul.f32 0.03125, %v645_v57  ;;  %v891_v22 = vmul.f32 %v1925_v1, %v2477_v7  ;;  %v1030_v26 = vadd.f32 %v2831_v61, %v960_v35 }
 0x16f   :  { %v703_v18 = vmul.f32 0.03125, %v583_v34  ;;  %1936 = vrsqrt.f32 %v766_v58  ;;  %1811 = vmatmul.mubr.f32.vlgmr.msra.gmra.mrb[0].mxu1 %v1061_v39  ;;  %v992_v2 = vmul.f32 %v2825_v3, %v922_v17 }
 0x170   :  { %v1927_v8 = vpop.eup %1926  ;;  %v798_v55 = vadd.f32 1e-05, %v734_v33  ;;  %v961_v50 = vmul.f32 %v2825_v3, %v891_v22  ;;  %1765 = vmatprep.mubr.f32.mxu0 %v1030_v26 }
 0x171   :  { %v767_v25 = vadd.f32 1e-05, %v703_v18  ;;  %v1929_v46 = vpop.eup %1928  ;;  %v647_v42 = vpop.xlane.xlu1 %646  ;;  %v1062_v53 = vadd.f32 %v2831_v61, %v992_v2  ;;  %v923_v63 = vmul.f32 %v1927_v8, %v2480_v16 }
 0x172   :  { %v585_v12 = vpop.xlane.xlu0 %584  ;;  %1938 = vrsqrt.f32 %v798_v55  ;;  %v735_v7 = vmul.f32 0.03125, %v647_v42  ;;  %v1031_v51 = vadd.f32 %v2831_v61, %v961_v50  ;;  %v892_v10 = vmul.f32 %v1929_v46, %v2489_v30 }
 0x173   :  { %v704_v0 = vmul.f32 0.03125, %v585_v12  ;;  %1940 = vrsqrt.f32 %v767_v25  ;;  %1813 = vmatprep.mubr.f32.mxu1 %v1062_v53  ;;  %v993_v47 = vmul.f32 %v2825_v3, %v923_v63 }
 0x174   :  { %v1931_v58 = vpop.eup %1930  ;;  %v799_v1 = vadd.f32 1e-05, %v735_v7  ;;  %1766 = vmatmul.mubr.f32.gmra.mrb[2].mxu0 %v1031_v51  ;;  %v962_v16 = vmul.f32 %v2825_v3, %v892_v10 }
 0x175   :  { %v768_v57 = vadd.f32 1e-05, %v704_v0  ;;  %v1933_v34 = vpop.eup %1932  ;;  %v649_v35 = vpop.xlane.xlu1 %648  ;;  %v1063_v17 = vadd.f32 %v2831_v61, %v993_v47  ;;  %v924_v33 = vmul.f32 %v1931_v58, %v2492_v59 }
 0x176   :  { %v587_v39 = vpop.xlane.xlu0 %586  ;;  %1942 = vrsqrt.f32 %v799_v1  ;;  %v736_v18 = vmul.f32 0.03125, %v649_v35  ;;  %v893_v30 = vmul.f32 %v1933_v34, %v2501_v62  ;;  %v1032_v26 = vadd.f32 %v2831_v61, %v962_v16 }
 0x177   :  { %v705_v22 = vmul.f32 0.03125, %v587_v39  ;;  %1944 = vrsqrt.f32 %v768_v57  ;;  %1814 = vmatmul.mubr.f32.gmra.mrb[2].mxu1 %v1063_v17  ;;  %v994_v2 = vmul.f32 %v2825_v3, %v924_v33  ;;  %v3199_v39 = vld [vmem:[#allocation28_spill] sm:$0xff] }
 0x178   :  { %v1935_v8 = vpop.eup %1934  ;;  %v800_v55 = vadd.f32 1e-05, %v736_v18  ;;  %v963_v50 = vmul.f32 %v2825_v3, %v893_v30  ;;  %1768 = vmatprep.mubr.f32.mxu0 %v1032_v26 }
 0x179   :  { %v769_v25 = vadd.f32 1e-05, %v705_v22  ;;  %v1937_v46 = vpop.eup %1936  ;;  %v651_v42 = vpop.xlane.xlu1 %650  ;;  %v1064_v12 = vadd.f32 %v2831_v61, %v994_v2  ;;  %v925_v53 = vmul.f32 %v1935_v8, %v2504_v24 }
 0x17a   :  { %v589_v59 = vpop.xlane.xlu0 %588  ;;  %1946 = vrsqrt.f32 %v800_v55  ;;  %v737_v62 = vmul.f32 0.03125, %v651_v42  ;;  %v1033_v7 = vadd.f32 %v2831_v61, %v963_v50  ;;  %v894_v0 = vmul.f32 %v1937_v46, %v2513_v38 }
 0x17b   :  { %v706_v63 = vmul.f32 0.03125, %v589_v59  ;;  %1948 = vrsqrt.f32 %v769_v25  ;;  %1816 = vmatprep.mubr.f32.mxu1 %v1064_v12  ;;  %v995_v51 = vmul.f32 %v2825_v3, %v925_v53 }
 0x17c   :  { %v1939_v10 = vpop.eup %1938  ;;  %v801_v47 = vadd.f32 1e-05, %v737_v62  ;;  %1769 = vmatmul.mubr.f32.gmra.mrb[4].mxu0 %v1033_v7  ;;  %v964_v24 = vmul.f32 %v2825_v3, %v894_v0 }
 0x17d   :  { %v770_v58 = vadd.f32 1e-05, %v706_v63  ;;  %v1941_v1 = vpop.eup %1940  ;;  %v653_v57 = vpop.xlane.xlu1 %652  ;;  %v1065_v35 = vadd.f32 %v2831_v61, %v995_v51  ;;  %v926_v16 = vmul.f32 %v1939_v10, %v3199_v39 }
 0x17e   :  { %v591_v34 = vpop.xlane.xlu0 %590  ;;  %1950 = vrsqrt.f32 %v801_v47  ;;  %v738_v17 = vmul.f32 0.03125, %v653_v57  ;;  %v895_v38 = vmul.f32 %v1941_v1, %v2525_v21  ;;  %v1034_v18 = vadd.f32 %v2831_v61, %v964_v24 }
 0x17f   :  { %v707_v33 = vmul.f32 0.03125, %v591_v34  ;;  %1952 = vrsqrt.f32 %v770_v58  ;;  %1817 = vmatmul.mubr.f32.gmra.mrb[4].mxu1 %v1065_v35  ;;  %v996_v22 = vmul.f32 %v2825_v3, %v926_v16 }
 0x180   :  { %v1943_v30 = vpop.eup %1942  ;;  %v802_v26 = vadd.f32 1e-05, %v738_v17  ;;  %v965_v8 = vmul.f32 %v2825_v3, %v895_v38  ;;  %1771 = vmatprep.mubr.f32.mxu0 %v1034_v18 }
 0x181   :  { %v771_v2 = vadd.f32 1e-05, %v707_v33  ;;  %v1945_v55 = vpop.eup %1944  ;;  %v655_v25 = vpop.xlane.xlu1 %654  ;;  %v1066_v46 = vadd.f32 %v2831_v61, %v996_v22  ;;  %v927_v42 = vmul.f32 %v1943_v30, %v2528_v32 }
 0x182   :  { %v593_v50 = vpop.xlane.xlu0 %592  ;;  %1954 = vrsqrt.f32 %v802_v26  ;;  %v739_v21 = vmul.f32 0.03125, %v655_v25  ;;  %v1035_v12 = vadd.f32 %v2831_v61, %v965_v8  ;;  %v896_v53 = vmul.f32 %v1945_v55, %v2537_v4 }
 0x183   :  { %v708_v59 = vmul.f32 0.03125, %v593_v50  ;;  %1956 = vrsqrt.f32 %v771_v2  ;;  %1819 = vmatprep.mubr.f32.mxu1 %v1066_v46  ;;  %v997_v62 = vmul.f32 %v2825_v3, %v927_v42 }
 0x184   :  { %v1947_v63 = vpop.eup %1946  ;;  %v803_v7 = vadd.f32 1e-05, %v739_v21  ;;  %1772 = vmatmul.mubr.f32.gmra.mrb[6].mxu0 %v1035_v12  ;;  %v966_v32 = vmul.f32 %v2825_v3, %v896_v53 }
 0x185   :  { %v772_v0 = vadd.f32 1e-05, %v708_v59  ;;  %v1949_v51 = vpop.eup %1948  ;;  %v657_v10 = vpop.xlane.xlu1 %656  ;;  %v1067_v58 = vadd.f32 %v2831_v61, %v997_v62  ;;  %v928_v1 = vmul.f32 %v1947_v63, %v2540_v36 }
 0x186   :  { %v595_v47 = vpop.xlane.xlu0 %594  ;;  %1958 = vrsqrt.f32 %v803_v7  ;;  %v740_v57 = vmul.f32 0.03125, %v657_v10  ;;  %v897_v4 = vmul.f32 %v1949_v51, %v2549_v9  ;;  %v1036_v24 = vadd.f32 %v2831_v61, %v966_v32 }
 0x187   :  { %v709_v34 = vmul.f32 0.03125, %v595_v47  ;;  %1960 = vrsqrt.f32 %v772_v0  ;;  %1820 = vmatmul.mubr.f32.gmra.mrb[6].mxu1 %v1067_v58  ;;  %v998_v35 = vmul.f32 %v2825_v3, %v928_v1 }
 0x188   :  { %v1951_v39 = vpop.eup %1950  ;;  %v804_v16 = vadd.f32 1e-05, %v740_v57  ;;  %v967_v33 = vmul.f32 %v2825_v3, %v897_v4  ;;  %1774 = vmatprep.mubr.f32.mxu0 %v1036_v24 }
 0x189   :  { %v773_v17 = vadd.f32 1e-05, %v709_v34  ;;  %v1953_v38 = vpop.eup %1952  ;;  %v659_v18 = vpop.xlane.xlu1 %658  ;;  %v1068_v22 = vadd.f32 %v2831_v61, %v998_v35  ;;  %v929_v30 = vmul.f32 %v1951_v39, %v2552_v40 }
 0x18a   :  { %v597_v36 = vpop.xlane.xlu0 %596  ;;  %1962 = vrsqrt.f32 %v804_v16  ;;  %v741_v9 = vmul.f32 0.03125, %v659_v18  ;;  %v1037_v2 = vadd.f32 %v2831_v61, %v967_v33  ;;  %v898_v8 = vmul.f32 %v1953_v38, %v2561_v6 }
 0x18b   :  { %v710_v26 = vmul.f32 0.03125, %v597_v36  ;;  %1964 = vrsqrt.f32 %v773_v17  ;;  %1822 = vmatprep.mubr.f32.mxu1 %v1068_v22  ;;  %v999_v55 = vmul.f32 %v2825_v3, %v929_v30 }
 0x18c   :  { %v1955_v25 = vpop.eup %1954  ;;  %v805_v50 = vadd.f32 1e-05, %v741_v9  ;;  %1775 = vmatmul.mubr.f32.gmra.mrb[8].mxu0 %v1037_v2  ;;  %v968_v40 = vmul.f32 %v2825_v3, %v898_v8 }
 0x18d   :  { %v774_v46 = vadd.f32 1e-05, %v710_v26  ;;  %v1957_v42 = vpop.eup %1956  ;;  %v661_v21 = vpop.xlane.xlu1 %660  ;;  %v1069_v12 = vadd.f32 %v2831_v61, %v999_v55  ;;  %v930_v53 = vmul.f32 %v1955_v25, %v2564_v44 }
 0x18e   :  { %v599_v59 = vpop.xlane.xlu0 %598  ;;  %1966 = vrsqrt.f32 %v805_v50  ;;  %v742_v62 = vmul.f32 0.03125, %v661_v21  ;;  %v899_v6 = vmul.f32 %v1957_v42, %v2573_v43  ;;  %v1038_v7 = vadd.f32 %v2831_v61, %v968_v40 }
 0x18f   :  { %v711_v63 = vmul.f32 0.03125, %v599_v59  ;;  %1968 = vrsqrt.f32 %v774_v46  ;;  %1823 = vmatmul.mubr.f32.gmra.mrb[8].mxu1 %v1069_v12  ;;  %v1000_v0 = vmul.f32 %v2825_v3, %v930_v53 }
 0x190   :  { %v1959_v51 = vpop.eup %1958  ;;  %v806_v10 = vadd.f32 1e-05, %v742_v62  ;;  %v969_v32 = vmul.f32 %v2825_v3, %v899_v6  ;;  %1777 = vmatprep.mubr.f32.mxu0 %v1038_v7 }
 0x191   :  { %v775_v47 = vadd.f32 1e-05, %v711_v63  ;;  %v1961_v58 = vpop.eup %1960  ;;  %v663_v1 = vpop.xlane.xlu1 %662  ;;  %v1070_v57 = vadd.f32 %v2831_v61, %v1000_v0  ;;  %v931_v34 = vmul.f32 %v1959_v51, %v2576_v48 }
 0x192   :  { %v601_v44 = vpop.xlane.xlu0 %600  ;;  %1970 = vrsqrt.f32 %v806_v10  ;;  %v743_v43 = vmul.f32 0.03125, %v663_v1  ;;  %v1039_v24 = vadd.f32 %v2831_v61, %v969_v32  ;;  %v900_v35 = vmul.f32 %v1961_v58, %v2585_v20 }
 0x193   :  { %v712_v4 = vmul.f32 0.03125, %v601_v44  ;;  %1972 = vrsqrt.f32 %v775_v47  ;;  %1825 = vmatprep.mubr.f32.mxu1 %v1070_v57  ;;  %v1001_v39 = vmul.f32 %v2825_v3, %v931_v34 }
 0x194   :  { %v1963_v16 = vpop.eup %1962  ;;  %v807_v17 = vadd.f32 1e-05, %v743_v43  ;;  %1778 = vmatmul.mubr.f32.gmra.mrb[10].mxu0 %v1039_v24  ;;  %v970_v48 = vmul.f32 %v2825_v3, %v900_v35 }
 0x195   :  { %v776_v33 = vadd.f32 1e-05, %v712_v4  ;;  %v1965_v38 = vpop.eup %1964  ;;  %v665_v18 = vpop.xlane.xlu1 %664  ;;  %v1071_v22 = vadd.f32 %v2831_v61, %v1001_v39  ;;  %v932_v30 = vmul.f32 %v1963_v16, %v2588_v45 }
 0x196   :  { %v603_v36 = vpop.xlane.xlu0 %602  ;;  %1974 = vrsqrt.f32 %v807_v17  ;;  %v744_v9 = vmul.f32 0.03125, %v665_v18  ;;  %v901_v20 = vmul.f32 %v1965_v38, %v2597_v29  ;;  %v1040_v2 = vadd.f32 %v2831_v61, %v970_v48 }
 0x197   :  { %v713_v26 = vmul.f32 0.03125, %v603_v36  ;;  %1976 = vrsqrt.f32 %v776_v33  ;;  %1826 = vmatmul.mubr.f32.gmra.mrb[10].mxu1 %v1071_v22  ;;  %v1002_v8 = vmul.f32 %v2825_v3, %v932_v30 }
 0x198   :  { %v1967_v55 = vpop.eup %1966  ;;  %v808_v25 = vadd.f32 1e-05, %v744_v9  ;;  %v971_v46 = vmul.f32 %v2825_v3, %v901_v20  ;;  %1780 = vmatprep.mubr.f32.mxu0 %v1040_v2 }
 0x199   :  { %v777_v50 = vadd.f32 1e-05, %v713_v26  ;;  %v1969_v42 = vpop.eup %1968  ;;  %v667_v21 = vpop.xlane.xlu1 %666  ;;  %v1072_v59 = vadd.f32 %v2831_v61, %v1002_v8  ;;  %v933_v40 = vmul.f32 %v1967_v55, %v2600_v49 }
 0x19a   :  { %v605_v45 = vpop.xlane.xlu0 %604  ;;  %1978 = vrsqrt.f32 %v808_v25  ;;  %v745_v29 = vmul.f32 0.03125, %v667_v21  ;;  %v1041_v53 = vadd.f32 %v2831_v61, %v971_v46  ;;  %v902_v62 = vmul.f32 %v1969_v42, %v2609_v54 }
 0x19b   :  { %v714_v12 = vmul.f32 0.03125, %v605_v45  ;;  %1980 = vrsqrt.f32 %v777_v50  ;;  %1828 = vmatprep.mubr.f32.mxu1 %v1072_v59  ;;  %v1003_v63 = vmul.f32 %v2825_v3, %v933_v40 }
 0x19c   :  { %v1971_v6 = vpop.eup %1970  ;;  %v809_v7 = vadd.f32 1e-05, %v745_v29  ;;  %1781 = vmatmul.mubr.f32.gmra.mrb[12].mxu0 %v1041_v53  ;;  %v972_v49 = vmul.f32 %v2825_v3, %v902_v62 }
 0x19d   :  { %v778_v0 = vadd.f32 1e-05, %v714_v12  ;;  %v1973_v51 = vpop.eup %1972  ;;  %v669_v10 = vpop.xlane.xlu1 %668  ;;  %v1073_v32 = vadd.f32 %v2831_v61, %v1003_v63  ;;  %v934_v58 = vmul.f32 %v1971_v6, %v2612_v52 }
 0x19e   :  { %v607_v47 = vpop.xlane.xlu0 %606  ;;  %1982 = vrsqrt.f32 %v809_v7  ;;  %v746_v1 = vmul.f32 0.03125, %v669_v10  ;;  %v903_v54 = vmul.f32 %v1973_v51, %v2621_v41  ;;  %v1042_v57 = vadd.f32 %v2831_v61, %v972_v49 }
 0x19f   :  { %v715_v44 = vmul.f32 0.03125, %v607_v47  ;;  %1984 = vrsqrt.f32 %v778_v0  ;;  %1829 = vmatmul.mubr.f32.gmra.mrb[12].mxu1 %v1073_v32  ;;  %v1004_v34 = vmul.f32 %v2825_v3, %v934_v58 }
 0x1a0   :  { %v1975_v43 = vpop.eup %1974  ;;  %v810_v4 = vadd.f32 1e-05, %v746_v1  ;;  %v973_v35 = vmul.f32 %v2825_v3, %v903_v54  ;;  %1783 = vmatprep.mubr.f32.mxu0 %v1042_v57 }
 0x1a1   :  { %v779_v24 = vadd.f32 1e-05, %v715_v44  ;;  %v1977_v39 = vpop.eup %1976  ;;  %v671_v16 = vpop.xlane.xlu1 %670  ;;  %v1074_v17 = vadd.f32 %v2831_v61, %v1004_v34  ;;  %v935_v33 = vmul.f32 %v1975_v43, %v2624_v56 }
 0x1a2   :  { %v609_v52 = vpop.xlane.xlu0 %608  ;;  %1986 = vrsqrt.f32 %v810_v4  ;;  %v747_v41 = vmul.f32 0.03125, %v671_v16  ;;  %v1043_v18 = vadd.f32 %v2831_v61, %v973_v35  ;;  %v904_v36 = vmul.f32 %v1977_v39, %v2633_v13 }
 0x1a3   :  { %v716_v38 = vmul.f32 0.03125, %v609_v52  ;;  %1988 = vrsqrt.f32 %v779_v24  ;;  %1831 = vmatprep.mubr.f32.mxu1 %v1074_v17  ;;  %v1005_v48 = vmul.f32 %v2825_v3, %v935_v33 }
 0x1a4   :  { %v1979_v22 = vpop.eup %1978  ;;  %v811_v30 = vadd.f32 1e-05, %v747_v41  ;;  %1784 = vmatmul.mubr.f32.gmra.mrb[14].mxu0 %v1043_v18  ;;  %v974_v56 = vmul.f32 %v2825_v3, %v904_v36 }
 0x1a5   :  { %v780_v9 = vadd.f32 1e-05, %v716_v38  ;;  %v1981_v26 = vpop.eup %1980  ;;  %v673_v20 = vpop.xlane.xlu1 %672  ;;  %v1075_v8 = vadd.f32 %v2831_v61, %v1005_v48  ;;  %v936_v55 = vmul.f32 %v1979_v22, %v2636_v60 }
 0x1a6   :  { %v611_v2 = vpop.xlane.xlu0 %610  ;;  %1990 = vrsqrt.f32 %v811_v30  ;;  %v748_v25 = vmul.f32 0.03125, %v673_v20  ;;  %v905_v13 = vmul.f32 %v1981_v26, %v2645_v5  ;;  %v1044_v46 = vadd.f32 %v2831_v61, %v974_v56 }
 0x1a7   :  { %v717_v50 = vmul.f32 0.03125, %v611_v2  ;;  %1992 = vrsqrt.f32 %v780_v9  ;;  %1832 = vmatmul.mubr.f32.gmra.mrb[14].mxu1 %v1075_v8  ;;  %v1006_v42 = vmul.f32 %v2825_v3, %v936_v55 }
 0x1a8   :  { %v1983_v21 = vpop.eup %1982  ;;  %v812_v45 = vadd.f32 1e-05, %v748_v25  ;;  %v975_v40 = vmul.f32 %v2825_v3, %v905_v13  ;;  %1786 = vmatprep.mubr.f32.mxu0 %v1044_v46 }
 0x1a9   :  { %v781_v59 = vadd.f32 1e-05, %v717_v50  ;;  %v1985_v29 = vpop.eup %1984  ;;  %v675_v12 = vpop.xlane.xlu1 %674  ;;  %v1076_v53 = vadd.f32 %v2831_v61, %v1006_v42  ;;  %v937_v62 = vmul.f32 %v1983_v21, %v2648_v14 }
 0x1aa   :  { %v613_v60 = vpop.xlane.xlu0 %612  ;;  %1994 = vrsqrt.f32 %v812_v45  ;;  %v749_v5 = vmul.f32 0.03125, %v675_v12  ;;  %v1045_v6 = vadd.f32 %v2831_v61, %v975_v40  ;;  %v906_v7 = vmul.f32 %v1985_v29, %v2657_v37 }
 0x1ab   :  { %v718_v63 = vmul.f32 0.03125, %v613_v60  ;;  %1996 = vrsqrt.f32 %v781_v59  ;;  %1834 = vmatprep.mubr.f32.mxu1 %v1076_v53  ;;  %v1007_v0 = vmul.f32 %v2825_v3, %v937_v62  ;;  %v3200_v53 = vld [vmem:[#allocation29_spill] sm:$0xff] }
 0x1ac   :  { %v1987_v51 = vpop.eup %1986  ;;  %v813_v10 = vadd.f32 1e-05, %v749_v5  ;;  %1787 = vmatmul.mubr.f32.gmra.mrb[16].mxu0 %v1045_v6  ;;  %v976_v14 = vmul.f32 %v2825_v3, %v906_v7 }
 0x1ad   :  { %v782_v47 = vadd.f32 1e-05, %v718_v63  ;;  %v1989_v49 = vpop.eup %1988  ;;  %v677_v32 = vpop.xlane.xlu1 %676  ;;  %v1077_v1 = vadd.f32 %v2831_v61, %v1007_v0  ;;  %v938_v44 = vmul.f32 %v1987_v51, %v2660_v11 }
 0x1ae   :  { %v615_v58 = vpop.xlane.xlu0 %614  ;;  %1998 = vrsqrt.f32 %v813_v10  ;;  %v750_v54 = vmul.f32 0.03125, %v677_v32  ;;  %v907_v37 = vmul.f32 %v1989_v49, %v2669_v27  ;;  %v1046_v34 = vadd.f32 %v2831_v61, %v976_v14  ;;  %v3201_v49 = vld [vmem:[#allocation30_spill] sm:$0xff] }
 0x1af   :  { %v719_v57 = vmul.f32 0.03125, %v615_v58  ;;  %2000 = vrsqrt.f32 %v782_v47  ;;  %1835 = vmatmul.mubr.f32.gmra.mrb[16].mxu1 %v1077_v1  ;;  %v1008_v43 = vmul.f32 %v2825_v3, %v938_v44  ;;  %v3202_v1 = vld [vmem:[#allocation31_spill] sm:$0xff] }
 0x1b0   :  { %v1991_v4 = vpop.eup %1990  ;;  %v814_v24 = vadd.f32 1e-05, %v750_v54  ;;  %v977_v39 = vmul.f32 %v2825_v3, %v907_v37  ;;  %1789 = vmatprep.mubr.f32.mxu0 %v1046_v34 }
 0x1b1   :  { %v783_v35 = vadd.f32 1e-05, %v719_v57  ;;  %v1993_v16 = vpop.eup %1992  ;;  %v679_v52 = vpop.xlane.xlu1 %678  ;;  %v1078_v17 = vadd.f32 %v2831_v61, %v1008_v43  ;;  %v939_v33 = vmul.f32 %v1991_v4, %v2672_v15 }
 0x1b2   :  { %v617_v11 = vpop.xlane.xlu0 %616  ;;  %2002 = vrsqrt.f32 %v814_v24  ;;  %v751_v27 = vmul.f32 0.03125, %v679_v52  ;;  %v1047_v38 = vadd.f32 %v2831_v61, %v977_v39  ;;  %v908_v18 = vmul.f32 %v1993_v16, %v2681_v19  ;;  %v3203_v52 = vld [vmem:[#allocation32_spill] sm:$0xff] }
 0x1b3   :  { %v720_v41 = vmul.f32 0.03125, %v617_v11  ;;  %2004 = vrsqrt.f32 %v783_v35  ;;  %1837 = vmatprep.mubr.f32.mxu1 %v1078_v17  ;;  %v1009_v36 = vmul.f32 %v2825_v3, %v939_v33 }
 0x1b4   :  { %v1995_v48 = vpop.eup %1994  ;;  %v815_v22 = vadd.f32 1e-05, %v751_v27  ;;  %1790 = vmatmul.mubr.f32.gmra.mrb[18].mxu0 %v1047_v38  ;;  %v978_v15 = vmul.f32 %v2825_v3, %v908_v18 }
 0x1b5   :  { %v784_v30 = vadd.f32 1e-05, %v720_v41  ;;  %v1997_v9 = vpop.eup %1996  ;;  %v681_v26 = vpop.xlane.xlu1 %680  ;;  %v1079_v2 = vadd.f32 %v2831_v61, %v1009_v36  ;;  %v940_v56 = vmul.f32 %v1995_v48, %v2684_v23  ;;  %v3204_v41 = vld [vmem:[#allocation11_spill] sm:$0xff] }
 0x1b6   :  { %v619_v20 = vpop.xlane.xlu0 %618  ;;  %2006 = vrsqrt.f32 %v815_v22  ;;  %v752_v8 = vmul.f32 0.03125, %v681_v26  ;;  %v909_v19 = vmul.f32 %v1997_v9, %v2693_v28  ;;  %v1048_v25 = vadd.f32 %v2831_v61, %v978_v15 }
 0x1b7   :  { %v721_v55 = vmul.f32 0.03125, %v619_v20  ;;  %2008 = vrsqrt.f32 %v784_v30  ;;  %1838 = vmatmul.mubr.f32.gmra.mrb[18].mxu1 %v1079_v2  ;;  %v1010_v50 = vmul.f32 %v2825_v3, %v940_v56  ;;  %v3205_v2 = vld [vmem:[#allocation12_spill] sm:$0xff] }
 0x1b8   :  { %v1999_v13 = vpop.eup %1998  ;;  %v816_v46 = vadd.f32 1e-05, %v752_v8  ;;  %v979_v21 = vmul.f32 %v2825_v3, %v909_v19  ;;  %1792 = vmatprep.mubr.f32.mxu0 %v1048_v25  ;;  %v3206_v19 = vld [vmem:[#allocation13_spill] sm:$0xff] }
 0x1b9   :  { %v785_v42 = vadd.f32 1e-05, %v721_v55  ;;  %v2001_v45 = vpop.eup %2000  ;;  %v683_v59 = vpop.xlane.xlu1 %682  ;;  %v1080_v40 = vadd.f32 %v2831_v61, %v1010_v50  ;;  %v941_v29 = vmul.f32 %v1999_v13, %v2696_v31 }
 0x1ba   :  { %v621_v23 = vpop.xlane.xlu0 %620  ;;  %2010 = vrsqrt.f32 %v816_v46  ;;  %v753_v28 = vmul.f32 0.03125, %v683_v59  ;;  %v1049_v60 = vadd.f32 %v2831_v61, %v979_v21  ;;  %v910_v62 = vmul.f32 %v2001_v45, %v3200_v53 }
 0x1bb   :  { %v722_v12 = vmul.f32 0.03125, %v621_v23  ;;  %2012 = vrsqrt.f32 %v785_v42  ;;  %1840 = vmatprep.mubr.f32.mxu1 %v1080_v40  ;;  %v1011_v5 = vmul.f32 %v2825_v3, %v941_v29 }
 0x1bc   :  { %v2003_v63 = vpop.eup %2002  ;;  %v817_v6 = vadd.f32 1e-05, %v753_v28  ;;  %1793 = vmatmul.mubr.f32.gmra.mrb[20].mxu0 %v1049_v60  ;;  %v980_v31 = vmul.f32 %v2825_v3, %v910_v62  ;;  %v3207_v28 = vld [vmem:[#allocation14_spill] sm:$0xff] }
 0x1bd   :  { %v786_v7 = vadd.f32 1e-05, %v722_v12  ;;  %v2005_v0 = vpop.eup %2004  ;;  %v685_v51 = vpop.xlane.xlu1 %684  ;;  %v1081_v47 = vadd.f32 %v2831_v61, %v1011_v5  ;;  %v942_v32 = vmul.f32 %v2003_v63, %v3201_v49  ;;  %v3208_v5 = vld [vmem:[#allocation15_spill] sm:$0xff] }
 0x1be   :  { %v623_v10 = vpop.xlane.xlu0 %622  ;;  %2014 = vrsqrt.f32 %v817_v6  ;;  %v754_v58 = vmul.f32 0.03125, %v685_v51  ;;  %v911_v44 = vmul.f32 %v2005_v0, %v3202_v1  ;;  %v1050_v54 = vadd.f32 %v2831_v61, %v980_v31 }
 0x1bf   :  { %v723_v14 = vmul.f32 0.03125, %v623_v10  ;;  %2016 = vrsqrt.f32 %v786_v7  ;;  %1841 = vmatmul.mubr.f32.gmra.mrb[20].mxu1 %v1081_v47  ;;  %v1012_v57 = vmul.f32 %v2825_v3, %v942_v32 }
 0x1c0   :  { %v2007_v37 = vpop.eup %2006  ;;  %v818_v34 = vadd.f32 1e-05, %v754_v58  ;;  %v981_v4 = vmul.f32 %v2825_v3, %v911_v44  ;;  %1795 = vmatprep.mubr.f32.mxu0 %v1050_v54  ;;  %v3209_v58 = vld [vmem:[#allocation16_spill] sm:$0xff]  ;;  %v3210_v54 = vld [vmem:[#allocation17_spill] sm:$0xff] }
 0x1c1   :  { %v787_v43 = vadd.f32 1e-05, %v723_v14  ;;  %v2009_v24 = vpop.eup %2008  ;;  %v687_v35 = vpop.xlane.xlu1 %686  ;;  %v1082_v16 = vadd.f32 %v2831_v61, %v1012_v57  ;;  %v943_v11 = vmul.f32 %v2007_v37, %v3203_v52 }
 0x1c2   :  { %v625_v39 = vpop.xlane.xlu0 %624  ;;  %2018 = vrsqrt.f32 %v818_v34  ;;  %v755_v17 = vmul.f32 0.03125, %v687_v35  ;;  %v1051_v27 = vadd.f32 %v2831_v61, %v981_v4  ;;  %v912_v38 = vmul.f32 %v2009_v24, %v3204_v41  ;;  %v3212_v41 = vld [vmem:[#allocation19_spill] sm:$0xff] }
 0x1c3   :  { %v724_v33 = vmul.f32 0.03125, %v625_v39  ;;  %2020 = vrsqrt.f32 %v787_v43  ;;  %1843 = vmatprep.mubr.f32.mxu1 %v1082_v16  ;;  %v1013_v18 = vmul.f32 %v2825_v3, %v943_v11  ;;  %v3211_v11 = vld [vmem:[#allocation18_spill] sm:$0xff] }
 0x1c4   :  { %v2011_v36 = vpop.eup %2010  ;;  %v819_v48 = vadd.f32 1e-05, %v755_v17  ;;  %1796 = vmatmul.mubr.f32.gmra.mrb[22].mxu0 %v1051_v27  ;;  %v982_v20 = vmul.f32 %v2825_v3, %v912_v38 }
 0x1c5   :  { %v788_v22 = vadd.f32 1e-05, %v724_v33  ;;  %v2013_v30 = vpop.eup %2012  ;;  %v689_v9 = vpop.xlane.xlu1 %688  ;;  %v1083_v15 = vadd.f32 %v2831_v61, %v1013_v18  ;;  %v944_v56 = vmul.f32 %v2011_v36, %v3205_v2  ;;  %v3214_v2 = vld [vmem:[#allocation21_spill] sm:$0xff] }
 0x1c6   :  { %v627_v26 = vpop.xlane.xlu0 %626  ;;  %2022 = vrsqrt.f32 %v819_v48  ;;  %v756_v8 = vmul.f32 0.03125, %v689_v9  ;;  %v913_v25 = vmul.f32 %v2013_v30, %v3206_v19  ;;  %v1052_v50 = vadd.f32 %v2831_v61, %v982_v20 }
 0x1c7   :  { %v725_v55 = vmul.f32 0.03125, %v627_v26  ;;  %2024 = vrsqrt.f32 %v788_v22  ;;  %1844 = vmatmul.mubr.f32.gmra.mrb[22].mxu1 %v1083_v15  ;;  %v1014_v13 = vmul.f32 %v2825_v3, %v944_v56  ;;  %v3213_v26 = vld [vmem:[#allocation20_spill] sm:$0xff] }
 0x1c8   :  { %v2015_v46 = vpop.eup %2014  ;;  %v820_v42 = vadd.f32 1e-05, %v756_v8  ;;  %v983_v45 = vmul.f32 %v2825_v3, %v913_v25  ;;  %1798 = vmatprep.mubr.f32.mxu0 %v1052_v50  ;;  %v2040_v8 = vld [vmem:[%s3101_s1] ss:$0 sm:$0xff] }
 0x1c9   :  { %v789_v21 = vadd.f32 1e-05, %v725_v55  ;;  %v2017_v59 = vpop.eup %2016  ;;  %v691_v23 = vpop.xlane.xlu1 %690  ;;  %v1084_v29 = vadd.f32 %v2831_v61, %v1014_v13  ;;  %v945_v12 = vmul.f32 %v2015_v46, %v3207_v28  ;;  %v2041_v50 = vld [vmem:[%s3102_s2] ss:$0 sm:$0xff]  ;;  %v3215_v46 = vld [vmem:[#allocation22_spill] sm:$0xff] }
 0x1ca   :  { %v629_v40 = vpop.xlane.xlu0 %628  ;;  %2026 = vrsqrt.f32 %v820_v42  ;;  %v757_v60 = vmul.f32 0.03125, %v691_v23  ;;  %v1053_v62 = vadd.f32 %v2831_v61, %v983_v45  ;;  %v914_v63 = vmul.f32 %v2017_v59, %v3208_v5 }
 0x1cb   :  { %v726_v53 = vmul.f32 0.03125, %v629_v40  ;;  %2028 = vrsqrt.f32 %v789_v21  ;;  %1846 = vmatprep.mubr.f32.mxu1 %v1084_v29  ;;  %v1015_v6 = vmul.f32 %v2825_v3, %v945_v12  ;;  %v3216_v21 = vld [vmem:[#allocation23_spill] sm:$0xff]  ;;  %v3217_v12 = vld [vmem:[#allocation24_spill] sm:$0xff] }
 0x1cc   :  { %v2019_v7 = vpop.eup %2018  ;;  %v821_v0 = vadd.f32 1e-05, %v757_v60  ;;  %1799 = vmatmul.mubr.f32.gmra.mrb[24].mxu0 %v1053_v62  ;;  %v984_v49 = vmul.f32 %v2825_v3, %v914_v63  ;;  %v3218_v62 = vld [vmem:[#allocation25_spill] sm:$0xff] }
 0x1cd   :  { %v790_v51 = vadd.f32 1e-05, %v726_v53  ;;  %v2021_v10 = vpop.eup %2020  ;;  %v693_v31 = vpop.xlane.xlu1 %692  ;;  %v1085_v32 = vadd.f32 %v2831_v61, %v1015_v6  ;;  %v946_v14 = vmul.f32 %v2019_v7, %v3209_v58 }
 0x1ce   :  { %v631_v47 = vpop.xlane.xlu0 %630  ;;  %2030 = vrsqrt.f32 %v821_v0  ;;  %v758_v1 = vmul.f32 0.03125, %v693_v31  ;;  %v915_v57 = vmul.f32 %v2021_v10, %v3210_v54  ;;  %v1054_v37 = vadd.f32 %v2831_v61, %v984_v49 }
 0x1cf   :  { %v727_v44 = vmul.f32 0.03125, %v631_v47  ;;  %2032 = vrsqrt.f32 %v790_v51  ;;  %1847 = vmatmul.mubr.f32.gmra.mrb[24].mxu1 %v1085_v32  ;;  %v1016_v34 = vmul.f32 %v2825_v3, %v946_v14  ;;  %v3219_v51 = vld [vmem:[#allocation33_spill] sm:$0xff]  ;;  %v3019_v32 = vld [vmem:[%s3104_s4] ss:$0 sm:$0xff]  ;;  %s2119_s4 = smov [#allocation7]  }
 0x1d0   :  { %v2023_v43 = vpop.eup %2022  ;;  %v822_v4 = vadd.f32 1e-05, %v758_v1  ;;  %v985_v35 = vmul.f32 %v2825_v3, %v915_v57  ;;  %1801 = vmatprep.mubr.f32.mxu0 %v1054_v37  ;;  %s1633_s25 = sshll.u32 %s2119_s4, 4  ;;  %s1634_s25 = int_to_ptr.vmem [resolvable:$true] %s1633_s25 }
 0x1d1   :  { %v791_v24 = vadd.f32 1e-05, %v727_v44  ;;  %v2025_v39 = vpop.eup %2024  ;;  %v695_v16 = vpop.xlane.xlu1 %694  ;;  %v1086_v52 = vadd.f32 %v2831_v61, %v1016_v34  ;;  %v947_v17 = vmul.f32 %v2023_v43, %v3211_v11  ;;  %s2086_s26 = scalar_lea.vmem %s1634_s25, 8192  ;;  %p2091_p3 = scmp.lt.s32.totalorder %s1634_s25, %s1634_s25 }
 0x1d2   :  { %2034 = vrsqrt.f32 %v822_v4  ;;  %v759_v33 = vmul.f32 0.03125, %v695_v16  ;;  %v1055_v27 = vadd.f32 %v2831_v61, %v985_v35  ;;  %v916_v38 = vmul.f32 %v2025_v39, %v3212_v41  ;;  %p2087_p2 = scmp.ne.s32.totalorder %s1634_s25, %s2086_s26  ;;  %p2092_p4 = scmp.lt.s32.totalorder %s2086_s26, %s2086_s26 }
 0x1d3   :  { %2036 = vrsqrt.f32 %v791_v24  ;;  %1849 = vmatprep.mubr.f32.mxu1 %v1086_v52  ;;  %v1017_v18 = vmul.f32 %v2825_v3, %v947_v17 }
 0x1d4   :  { %v2027_v36 = vpop.eup %2026  ;;  %v823_v48 = vadd.f32 1e-05, %v759_v33  ;;  %1802 = vmatmul.mubr.f32.gmra.mrb[26].mxu0 %v1055_v27  ;;  %v986_v22 = vmul.f32 %v2825_v3, %v916_v38  ;;  %p2093_p5 = por %p2092_p4, %p2091_p3 }
 0x1d5   :  { %v2029_v30 = vpop.eup %2028  ;;  %v1087_v9 = vadd.f32 %v2831_v61, %v1017_v18  ;;  %v948_v20 = vmul.f32 %v2027_v36, %v3213_v26 }
 0x1d6   :  { %2038 = vrsqrt.f32 %v823_v48  ;;  %v1056_v15 = vadd.f32 %v2831_v61, %v986_v22  ;;  %v917_v56 = vmul.f32 %v2029_v30, %v3214_v2  ;;  %p2094_p6 = pnand %p2093_p5, %p2087_p2 }
 0x1d7   :  { %1850 = vmatmul.mubr.f32.gmra.mrb[26].mxu1 %v1087_v9  ;;  %v1018_v55 = vmul.f32 %v2040_v8, %v948_v20 }
 0x1d8   :  { %v2031_v19 = vpop.eup %2030  ;;  %1804 = vmatprep.mubr.f32.mxu0 %v1056_v15  ;;  %v987_v25 = vmul.f32 %v2040_v8, %v917_v56 }
 0x1d9   :  { %v2033_v3 = vpop.eup %2032  ;;  %v1088_v13 = vadd.f32 %v2041_v50, %v1018_v55  ;;  %v949_v42 = vmul.f32 %v2031_v19, %v3215_v46 }
 0x1da   :  { %v1057_v61 = vadd.f32 %v2041_v50, %v987_v25  ;;  %v918_v45 = vmul.f32 %v2033_v3, %v3216_v21 }
 0x1db   :  { %1852 = vmatprep.mubr.f32.mxu1 %v1088_v13  ;;  %v1019_v59 = vmul.f32 %v2040_v8, %v949_v42 }
 0x1dc   :  { %v2035_v23 = vpop.eup %2034  ;;  %1805 = vmatmul.mubr.f32.gmra.mrb[28].mxu0 %v1057_v61  ;;  %v988_v40 = vmul.f32 %v2040_v8, %v918_v45 }
 0x1dd   :  { %v2037_v29 = vpop.eup %2036  ;;  %v1089_v28 = vadd.f32 %v2041_v50, %v1019_v59  ;;  %v950_v60 = vmul.f32 %v2035_v23, %v3217_v12 }
 0x1de   :  { %v1058_v53 = vadd.f32 %v2041_v50, %v988_v40  ;;  %v919_v5 = vmul.f32 %v2037_v29, %v3218_v62 }
 0x1df   :  { %1853 = vmatmul.mubr.f32.gmra.mrb[28].mxu1 %v1089_v28  ;;  %v1020_v63 = vmul.f32 %v2040_v8, %v950_v60 }
 0x1e0   :  { %v2039_v6 = vpop.eup %2038  ;;  %1807 = vmatprep.mubr.f32.mxu0 %v1058_v53  ;;  %v989_v7 = vmul.f32 %v2040_v8, %v919_v5 }
 0x1e1   :  { %v1090_v0 = vadd.f32 %v2041_v50, %v1020_v63  ;;  %v951_v10 = vmul.f32 %v2039_v6, %v3219_v51 }
 0x1e2   :  { %v1059_v31 = vadd.f32 %v2041_v50, %v989_v7 }
 0x1e3   :  { %1855 = vmatprep.mubr.f32.mxu1 %v1090_v0  ;;  %v1021_v47 = vmul.f32 %v2040_v8, %v951_v10 }
 0x1e4   :  { %1808 = vmatmul.mubr.f32.gmra.mrb[30].mxu0 %v1059_v31 }
 0x1e5   :  { %v1091_v49 = vadd.f32 %v2041_v50, %v1021_v47 }
 0x1e7   :  { %1856 = vmatmul.mubr.f32.gmra.mrb[30].mxu1 %v1091_v49 }
 0x23f   :  { %v1764_v58 = vpop.f32.mrb[0].mxu0 }
 0x240   :  { %v1187_v14 = vadd.f32 %v1764_v58, %v3019_v32  ;;  %v1181_v1 = vpop.f32.mrb[1].mxu0 }
 0x241   :  { %v1182_v44 = vadd.f32 %v3019_v32, %v1181_v1 }
 0x242   :  { %v1501_v54 = vmax.f32 %v1187_v14, 0.0  ;;  %v1812_v57 = vpop.f32.mrb[0].mxu1 }
 0x243   :  { %v1500_v37 = vmax.f32 %v1182_v44, 0.0  ;;  %v1347_v34 = vadd.f32 %v1812_v57, %v3019_v32  ;;  %v1341_v43 = vpop.f32.mrb[1].mxu1 }
 0x244   :  { %1565 = vst [vmem:[#allocation7 + $0x8] sm:$0xff] %v1501_v54  ;;  %v1342_v4 = vadd.f32 %v3019_v32, %v1341_v43 }
 0x245   :  { %1564 = vst [vmem:[#allocation7] sm:$0xff] %v1500_v37  ;;  %v1533_v24 = vmax.f32 %v1347_v34, 0.0 }
 0x246   :  { %v1532_v35 = vmax.f32 %v1342_v4, 0.0 }
 0x247   :  { %1597 = vst [vmem:[#allocation7 + $0x108] sm:$0xff] %v1533_v24  ;;  %v1767_v39 = vpop.f32.mrb[2].mxu0 }
 0x248   :  { %1596 = vst [vmem:[#allocation7 + $0x100] sm:$0xff] %v1532_v35  ;;  %v1197_v16 = vadd.f32 %v1767_v39, %v3019_v32  ;;  %v1191_v52 = vpop.f32.mrb[3].mxu0 }
 0x249   :  { %v1192_v11 = vadd.f32 %v3019_v32, %v1191_v52 }
 0x24a   :  { %v1503_v17 = vmax.f32 %v1197_v16, 0.0  ;;  %v1815_v33 = vpop.f32.mrb[2].mxu1 }
 0x24b   :  { %v1502_v27 = vmax.f32 %v1192_v11, 0.0  ;;  %v1357_v41 = vadd.f32 %v1815_v33, %v3019_v32  ;;  %v1351_v38 = vpop.f32.mrb[3].mxu1 }
 0x24c   :  { %1567 = vst [vmem:[#allocation7 + $0x18] sm:$0xff] %v1503_v17  ;;  %v1352_v18 = vadd.f32 %v3019_v32, %v1351_v38 }
 0x24d   :  { %1566 = vst [vmem:[#allocation7 + $0x10] sm:$0xff] %v1502_v27  ;;  %v1535_v36 = vmax.f32 %v1357_v41, 0.0 }
 0x24e   :  { %v1534_v48 = vmax.f32 %v1352_v18, 0.0 }
 0x24f   :  { %1599 = vst [vmem:[#allocation7 + $0x118] sm:$0xff] %v1535_v36  ;;  %v1770_v22 = vpop.f32.mrb[4].mxu0 }
 0x250   :  { %1598 = vst [vmem:[#allocation7 + $0x110] sm:$0xff] %v1534_v48  ;;  %v1207_v30 = vadd.f32 %v1770_v22, %v3019_v32  ;;  %v1201_v9 = vpop.f32.mrb[5].mxu0 }
 0x251   :  { %v1202_v26 = vadd.f32 %v3019_v32, %v1201_v9 }
 0x252   :  { %v1505_v20 = vmax.f32 %v1207_v30, 0.0  ;;  %v1818_v15 = vpop.f32.mrb[4].mxu1 }
 0x253   :  { %v1504_v2 = vmax.f32 %v1202_v26, 0.0  ;;  %v1367_v56 = vadd.f32 %v1818_v15, %v3019_v32  ;;  %v1361_v8 = vpop.f32.mrb[5].mxu1 }
 0x254   :  { %1569 = vst [vmem:[#allocation7 + $0x28] sm:$0xff] %v1505_v20  ;;  %v1362_v55 = vadd.f32 %v3019_v32, %v1361_v8 }
 0x255   :  { %1568 = vst [vmem:[#allocation7 + $0x20] sm:$0xff] %v1504_v2  ;;  %v1537_v19 = vmax.f32 %v1367_v56, 0.0 }
 0x256   :  { %v1536_v25 = vmax.f32 %v1362_v55, 0.0 }
 0x257   :  { %1601 = vst [vmem:[#allocation7 + $0x128] sm:$0xff] %v1537_v19  ;;  %v1773_v3 = vpop.f32.mrb[6].mxu0 }
 0x258   :  { %1600 = vst [vmem:[#allocation7 + $0x120] sm:$0xff] %v1536_v25  ;;  %v1217_v50 = vadd.f32 %v1773_v3, %v3019_v32  ;;  %v1211_v13 = vpop.f32.mrb[7].mxu0 }
 0x259   :  { %v1212_v46 = vadd.f32 %v3019_v32, %v1211_v13 }
 0x25a   :  { %v1507_v42 = vmax.f32 %v1217_v50, 0.0  ;;  %v1821_v61 = vpop.f32.mrb[6].mxu1 }
 0x25b   :  { %v1506_v21 = vmax.f32 %v1212_v46, 0.0  ;;  %v1377_v45 = vadd.f32 %v1821_v61, %v3019_v32  ;;  %v1371_v59 = vpop.f32.mrb[7].mxu1 }
 0x25c   :  { %1571 = vst [vmem:[#allocation7 + $0x38] sm:$0xff] %v1507_v42  ;;  %v1372_v23 = vadd.f32 %v3019_v32, %v1371_v59 }
 0x25d   :  { %1570 = vst [vmem:[#allocation7 + $0x30] sm:$0xff] %v1506_v21  ;;  %v1539_v40 = vmax.f32 %v1377_v45, 0.0 }
 0x25e   :  { %v1538_v29 = vmax.f32 %v1372_v23, 0.0 }
 0x25f   :  { %1603 = vst [vmem:[#allocation7 + $0x138] sm:$0xff] %v1539_v40  ;;  %v1776_v28 = vpop.f32.mrb[8].mxu0 }
 0x260   :  { %1602 = vst [vmem:[#allocation7 + $0x130] sm:$0xff] %v1538_v29  ;;  %v1227_v12 = vadd.f32 %v1776_v28, %v3019_v32  ;;  %v1221_v60 = vpop.f32.mrb[9].mxu0 }
 0x261   :  { %v1222_v53 = vadd.f32 %v3019_v32, %v1221_v60 }
 0x262   :  { %v1509_v62 = vmax.f32 %v1227_v12, 0.0  ;;  %v1824_v5 = vpop.f32.mrb[8].mxu1 }
 0x263   :  { %v1508_v63 = vmax.f32 %v1222_v53, 0.0  ;;  %v1387_v6 = vadd.f32 %v1824_v5, %v3019_v32  ;;  %v1381_v7 = vpop.f32.mrb[9].mxu1 }
 0x264   :  { %1573 = vst [vmem:[#allocation7 + $0x48] sm:$0xff] %v1509_v62  ;;  %v1382_v0 = vadd.f32 %v3019_v32, %v1381_v7 }
 0x265   :  { %1572 = vst [vmem:[#allocation7 + $0x40] sm:$0xff] %v1508_v63  ;;  %v1541_v51 = vmax.f32 %v1387_v6, 0.0 }
 0x266   :  { %v1540_v10 = vmax.f32 %v1382_v0, 0.0 }
 0x267   :  { %1605 = vst [vmem:[#allocation7 + $0x148] sm:$0xff] %v1541_v51  ;;  %v1779_v31 = vpop.f32.mrb[10].mxu0 }
 0x268   :  { %1604 = vst [vmem:[#allocation7 + $0x140] sm:$0xff] %v1540_v10  ;;  %v1237_v47 = vadd.f32 %v1779_v31, %v3019_v32  ;;  %v1231_v49 = vpop.f32.mrb[11].mxu0 }
 0x269   :  { %v1232_v58 = vadd.f32 %v3019_v32, %v1231_v49 }
 0x26a   :  { %v1511_v14 = vmax.f32 %v1237_v47, 0.0  ;;  %v1827_v1 = vpop.f32.mrb[10].mxu1 }
 0x26b   :  { %v1510_v44 = vmax.f32 %v1232_v58, 0.0  ;;  %v1397_v54 = vadd.f32 %v1827_v1, %v3019_v32  ;;  %v1391_v57 = vpop.f32.mrb[11].mxu1 }
 0x26c   :  { %1575 = vst [vmem:[#allocation7 + $0x58] sm:$0xff] %v1511_v14  ;;  %v1392_v37 = vadd.f32 %v3019_v32, %v1391_v57 }
 0x26d   :  { %1574 = vst [vmem:[#allocation7 + $0x50] sm:$0xff] %v1510_v44  ;;  %v1543_v34 = vmax.f32 %v1397_v54, 0.0 }
 0x26e   :  { %v1542_v43 = vmax.f32 %v1392_v37, 0.0 }
 0x26f   :  { %1607 = vst [vmem:[#allocation7 + $0x158] sm:$0xff] %v1543_v34  ;;  %v1782_v4 = vpop.f32.mrb[12].mxu0 }
 0x270   :  { %1606 = vst [vmem:[#allocation7 + $0x150] sm:$0xff] %v1542_v43  ;;  %v1247_v24 = vadd.f32 %v1782_v4, %v3019_v32  ;;  %v1241_v35 = vpop.f32.mrb[13].mxu0 }
 0x271   :  { %v1242_v39 = vadd.f32 %v3019_v32, %v1241_v35 }
 0x272   :  { %v1513_v16 = vmax.f32 %v1247_v24, 0.0  ;;  %v1830_v52 = vpop.f32.mrb[12].mxu1 }
 0x273   :  { %v1512_v11 = vmax.f32 %v1242_v39, 0.0  ;;  %v1407_v17 = vadd.f32 %v1830_v52, %v3019_v32  ;;  %v1401_v33 = vpop.f32.mrb[13].mxu1 }
 0x274   :  { %1577 = vst [vmem:[#allocation7 + $0x68] sm:$0xff] %v1513_v16  ;;  %v1402_v27 = vadd.f32 %v3019_v32, %v1401_v33 }
 0x275   :  { %1576 = vst [vmem:[#allocation7 + $0x60] sm:$0xff] %v1512_v11  ;;  %v1545_v41 = vmax.f32 %v1407_v17, 0.0 }
 0x276   :  { %v1544_v38 = vmax.f32 %v1402_v27, 0.0 }
 0x277   :  { %1609 = vst [vmem:[#allocation7 + $0x168] sm:$0xff] %v1545_v41  ;;  %v1785_v18 = vpop.f32.mrb[14].mxu0 }
 0x278   :  { %1608 = vst [vmem:[#allocation7 + $0x160] sm:$0xff] %v1544_v38  ;;  %v1257_v36 = vadd.f32 %v1785_v18, %v3019_v32  ;;  %v1251_v48 = vpop.f32.mrb[15].mxu0 }
 0x279   :  { %v1252_v22 = vadd.f32 %v3019_v32, %v1251_v48 }
 0x27a   :  { %v1515_v30 = vmax.f32 %v1257_v36, 0.0  ;;  %v1833_v9 = vpop.f32.mrb[14].mxu1 }
 0x27b   :  { %v1514_v26 = vmax.f32 %v1252_v22, 0.0  ;;  %v1417_v20 = vadd.f32 %v1833_v9, %v3019_v32  ;;  %v1411_v15 = vpop.f32.mrb[15].mxu1 }
 0x27c   :  { %1579 = vst [vmem:[#allocation7 + $0x78] sm:$0xff] %v1515_v30  ;;  %v1412_v2 = vadd.f32 %v3019_v32, %v1411_v15 }
 0x27d   :  { %1578 = vst [vmem:[#allocation7 + $0x70] sm:$0xff] %v1514_v26  ;;  %v1547_v56 = vmax.f32 %v1417_v20, 0.0 }
 0x27e   :  { %v1546_v8 = vmax.f32 %v1412_v2, 0.0 }
 0x27f   :  { %1611 = vst [vmem:[#allocation7 + $0x178] sm:$0xff] %v1547_v56  ;;  %v1788_v55 = vpop.f32.mrb[16].mxu0 }
 0x280   :  { %1610 = vst [vmem:[#allocation7 + $0x170] sm:$0xff] %v1546_v8  ;;  %v1267_v19 = vadd.f32 %v1788_v55, %v3019_v32  ;;  %v1261_v25 = vpop.f32.mrb[17].mxu0 }
 0x281   :  { %v1262_v3 = vadd.f32 %v3019_v32, %v1261_v25 }
 0x282   :  { %v1517_v50 = vmax.f32 %v1267_v19, 0.0  ;;  %v1836_v13 = vpop.f32.mrb[16].mxu1 }
 0x283   :  { %v1516_v46 = vmax.f32 %v1262_v3, 0.0  ;;  %v1427_v42 = vadd.f32 %v1836_v13, %v3019_v32  ;;  %v1421_v61 = vpop.f32.mrb[17].mxu1 }
 0x284   :  { %1581 = vst [vmem:[#allocation7 + $0x88] sm:$0xff] %v1517_v50  ;;  %v1422_v21 = vadd.f32 %v3019_v32, %v1421_v61 }
 0x285   :  { %1580 = vst [vmem:[#allocation7 + $0x80] sm:$0xff] %v1516_v46  ;;  %v1549_v45 = vmax.f32 %v1427_v42, 0.0 }
 0x286   :  { %v1548_v59 = vmax.f32 %v1422_v21, 0.0 }
 0x287   :  { %1613 = vst [vmem:[#allocation7 + $0x188] sm:$0xff] %v1549_v45  ;;  %v1791_v23 = vpop.f32.mrb[18].mxu0 }
 0x288   :  { %1612 = vst [vmem:[#allocation7 + $0x180] sm:$0xff] %v1548_v59  ;;  %v1277_v40 = vadd.f32 %v1791_v23, %v3019_v32  ;;  %v1271_v29 = vpop.f32.mrb[19].mxu0 }
 0x289   :  { %v1272_v28 = vadd.f32 %v3019_v32, %v1271_v29 }
 0x28a   :  { %v1519_v12 = vmax.f32 %v1277_v40, 0.0  ;;  %v1839_v60 = vpop.f32.mrb[18].mxu1 }
 0x28b   :  { %v1518_v53 = vmax.f32 %v1272_v28, 0.0  ;;  %v1437_v62 = vadd.f32 %v1839_v60, %v3019_v32  ;;  %v1431_v5 = vpop.f32.mrb[19].mxu1 }
 0x28c   :  { %1583 = vst [vmem:[#allocation7 + $0x98] sm:$0xff] %v1519_v12  ;;  %v1432_v63 = vadd.f32 %v3019_v32, %v1431_v5 }
 0x28d   :  { %1582 = vst [vmem:[#allocation7 + $0x90] sm:$0xff] %v1518_v53  ;;  %v1551_v6 = vmax.f32 %v1437_v62, 0.0 }
 0x28e   :  { %v1550_v7 = vmax.f32 %v1432_v63, 0.0 }
 0x28f   :  { %1615 = vst [vmem:[#allocation7 + $0x198] sm:$0xff] %v1551_v6  ;;  %v1794_v0 = vpop.f32.mrb[20].mxu0 }
 0x290   :  { %1614 = vst [vmem:[#allocation7 + $0x190] sm:$0xff] %v1550_v7  ;;  %v1287_v51 = vadd.f32 %v1794_v0, %v3019_v32  ;;  %v1281_v10 = vpop.f32.mrb[21].mxu0 }
 0x291   :  { %v1282_v31 = vadd.f32 %v3019_v32, %v1281_v10 }
 0x292   :  { %v1521_v47 = vmax.f32 %v1287_v51, 0.0  ;;  %v1842_v49 = vpop.f32.mrb[20].mxu1 }
 0x293   :  { %v1520_v58 = vmax.f32 %v1282_v31, 0.0  ;;  %v1447_v14 = vadd.f32 %v1842_v49, %v3019_v32  ;;  %v1441_v1 = vpop.f32.mrb[21].mxu1 }
 0x294   :  { %1585 = vst [vmem:[#allocation7 + $0xa8] sm:$0xff] %v1521_v47  ;;  %v1442_v44 = vadd.f32 %v3019_v32, %v1441_v1 }
 0x295   :  { %1584 = vst [vmem:[#allocation7 + $0xa0] sm:$0xff] %v1520_v58  ;;  %v1553_v54 = vmax.f32 %v1447_v14, 0.0 }
 0x296   :  { %v1552_v57 = vmax.f32 %v1442_v44, 0.0 }
 0x297   :  { %1617 = vst [vmem:[#allocation7 + $0x1a8] sm:$0xff] %v1553_v54  ;;  %v1797_v37 = vpop.f32.mrb[22].mxu0 }
 0x298   :  { %1616 = vst [vmem:[#allocation7 + $0x1a0] sm:$0xff] %v1552_v57  ;;  %v1297_v34 = vadd.f32 %v1797_v37, %v3019_v32  ;;  %v1291_v43 = vpop.f32.mrb[23].mxu0 }
 0x299   :  { %v1292_v4 = vadd.f32 %v3019_v32, %v1291_v43 }
 0x29a   :  { %v1523_v24 = vmax.f32 %v1297_v34, 0.0  ;;  %v1845_v35 = vpop.f32.mrb[22].mxu1 }
 0x29b   :  { %v1522_v39 = vmax.f32 %v1292_v4, 0.0  ;;  %v1457_v16 = vadd.f32 %v1845_v35, %v3019_v32  ;;  %v1451_v52 = vpop.f32.mrb[23].mxu1 }
 0x29c   :  { %1587 = vst [vmem:[#allocation7 + $0xb8] sm:$0xff] %v1523_v24  ;;  %v1452_v11 = vadd.f32 %v3019_v32, %v1451_v52 }
 0x29d   :  { %1586 = vst [vmem:[#allocation7 + $0xb0] sm:$0xff] %v1522_v39  ;;  %v1555_v17 = vmax.f32 %v1457_v16, 0.0 }
 0x29e   :  { %v1554_v33 = vmax.f32 %v1452_v11, 0.0 }
 0x29f   :  { %1619 = vst [vmem:[#allocation7 + $0x1b8] sm:$0xff] %v1555_v17  ;;  %v1800_v27 = vpop.f32.mrb[24].mxu0 }
 0x2a0   :  { %1618 = vst [vmem:[#allocation7 + $0x1b0] sm:$0xff] %v1554_v33  ;;  %v1307_v41 = vadd.f32 %v1800_v27, %v3019_v32  ;;  %v1301_v38 = vpop.f32.mrb[25].mxu0 }
 0x2a1   :  { %v1302_v18 = vadd.f32 %v3019_v32, %v1301_v38 }
 0x2a2   :  { %v1525_v36 = vmax.f32 %v1307_v41, 0.0  ;;  %v1848_v48 = vpop.f32.mrb[24].mxu1 }
 0x2a3   :  { %v1524_v22 = vmax.f32 %v1302_v18, 0.0  ;;  %v1467_v30 = vadd.f32 %v1848_v48, %v3019_v32  ;;  %v1461_v9 = vpop.f32.mrb[25].mxu1 }
 0x2a4   :  { %1589 = vst [vmem:[#allocation7 + $0xc8] sm:$0xff] %v1525_v36  ;;  %v1462_v26 = vadd.f32 %v3019_v32, %v1461_v9 }
 0x2a5   :  { %1588 = vst [vmem:[#allocation7 + $0xc0] sm:$0xff] %v1524_v22  ;;  %v1557_v20 = vmax.f32 %v1467_v30, 0.0 }
 0x2a6   :  { %v1556_v15 = vmax.f32 %v1462_v26, 0.0 }
 0x2a7   :  { %1621 = vst [vmem:[#allocation7 + $0x1c8] sm:$0xff] %v1557_v20  ;;  %v1803_v2 = vpop.f32.mrb[26].mxu0 }
 0x2a8   :  { %1620 = vst [vmem:[#allocation7 + $0x1c0] sm:$0xff] %v1556_v15  ;;  %v1317_v56 = vadd.f32 %v1803_v2, %v3019_v32  ;;  %v1311_v8 = vpop.f32.mrb[27].mxu0 }
 0x2a9   :  { %v1312_v55 = vadd.f32 %v3019_v32, %v1311_v8 }
 0x2aa   :  { %v1527_v19 = vmax.f32 %v1317_v56, 0.0  ;;  %v1851_v25 = vpop.f32.mrb[26].mxu1 }
 0x2ab   :  { %v1526_v3 = vmax.f32 %v1312_v55, 0.0  ;;  %v1477_v50 = vadd.f32 %v1851_v25, %v3019_v32  ;;  %v1471_v13 = vpop.f32.mrb[27].mxu1 }
 0x2ac   :  { %1591 = vst [vmem:[#allocation7 + $0xd8] sm:$0xff] %v1527_v19  ;;  %v1472_v46 = vadd.f32 %v3019_v32, %v1471_v13 }
 0x2ad   :  { %1590 = vst [vmem:[#allocation7 + $0xd0] sm:$0xff] %v1526_v3  ;;  %v1559_v42 = vmax.f32 %v1477_v50, 0.0 }
 0x2ae   :  { %v1558_v61 = vmax.f32 %v1472_v46, 0.0 }
 0x2af   :  { %1623 = vst [vmem:[#allocation7 + $0x1d8] sm:$0xff] %v1559_v42  ;;  %v1806_v21 = vpop.f32.mrb[28].mxu0 }
 0x2b0   :  { %1622 = vst [vmem:[#allocation7 + $0x1d0] sm:$0xff] %v1558_v61  ;;  %v1327_v45 = vadd.f32 %v1806_v21, %v3019_v32  ;;  %v1321_v59 = vpop.f32.mrb[29].mxu0 }
 0x2b1   :  { %v1322_v23 = vadd.f32 %v3019_v32, %v1321_v59 }
 0x2b2   :  { %v1529_v40 = vmax.f32 %v1327_v45, 0.0  ;;  %v1854_v29 = vpop.f32.mrb[28].mxu1 }
 0x2b3   :  { %v1528_v28 = vmax.f32 %v1322_v23, 0.0  ;;  %v1487_v12 = vadd.f32 %v1854_v29, %v3019_v32  ;;  %v1481_v60 = vpop.f32.mrb[29].mxu1 }
 0x2b4   :  { %1593 = vst [vmem:[#allocation7 + $0xe8] sm:$0xff] %v1529_v40  ;;  %v1482_v53 = vadd.f32 %v3019_v32, %v1481_v60 }
 0x2b5   :  { %1592 = vst [vmem:[#allocation7 + $0xe0] sm:$0xff] %v1528_v28  ;;  %v1561_v62 = vmax.f32 %v1487_v12, 0.0 }
 0x2b6   :  { %v1560_v5 = vmax.f32 %v1482_v53, 0.0 }
 0x2b7   :  { %1625 = vst [vmem:[#allocation7 + $0x1e8] sm:$0xff] %v1561_v62  ;;  %v1809_v63 = vpop.f32.mrb[30].mxu0 }
 0x2b8   :  { %1624 = vst [vmem:[#allocation7 + $0x1e0] sm:$0xff] %v1560_v5  ;;  %v1337_v6 = vadd.f32 %v1809_v63, %v3019_v32  ;;  %v1331_v7 = vpop.f32.mrb[31].mxu0 }
 0x2b9   :  { %v1332_v0 = vadd.f32 %v3019_v32, %v1331_v7 }
 0x2ba   :  { %v1531_v51 = vmax.f32 %v1337_v6, 0.0  ;;  %v1857_v10 = vpop.f32.mrb[30].mxu1 }
 0x2bb   :  { %v1530_v31 = vmax.f32 %v1332_v0, 0.0  ;;  %v1497_v47 = vadd.f32 %v1857_v10, %v3019_v32  ;;  %v1491_v49 = vpop.f32.mrb[31].mxu1 }
 0x2bc   :  { %1595 = vst [vmem:[#allocation7 + $0xf8] sm:$0xff] %v1531_v51  ;;  %v1492_v58 = vadd.f32 %v3019_v32, %v1491_v49 }
 0x2bd   :  { %1594 = vst [vmem:[#allocation7 + $0xf0] sm:$0xff] %v1530_v31  ;;  %v1563_v14 = vmax.f32 %v1497_v47, 0.0 }
 0x2be   :  { %v1562_v1 = vmax.f32 %v1492_v58, 0.0 }
 0x2bf   :  { %1627 = vst [vmem:[#allocation7 + $0x1f8] sm:$0xff] %v1563_v14 }
 0x2c0   :  { %1626 = vst [vmem:[#allocation7 + $0x1f0] sm:$0xff] %v1562_v1 }
 0x2c1   :  { %2097 = shalt.err (!%p2094_p6)
}
 0x2c2   :  { %s2098_s6 = scalar_lea.hbm %s3105_s5, 8192 }
 0x2c3   :  { %p2099_p7 = scmp.ne.s32.totalorder %s3105_s5, %s2098_s6  ;;  %p2102_p8 = scmp.lt.u32.totalorder %s2098_s6, %s3105_s5 }
 0x2c5   :  { %p2104_p9 = pnand %p2102_p8, %p2099_p7 }
 0x2c7   :  { %2107 = shalt.err (!%p2104_p9)
}
 0x2c8   :  { %1639 = dma.vmem_to_hbm [thread:$0]  %s1634_s25, 8192, %s3105_s5, [#allocation4], %s2115_s28, %s2115_s28, %s2116_s29  }
 0x2c9   :  { %2112 = dma.done.wait [#allocation4], 8192  }
 0x2ca   :  { %2113 = vsyncadd [#allocation4], 4294959104 }
 0x2cb   :  { %1643 = vsyncpa [#allocation3], 1 }
 0x2cc   :  { %1644 = vsyncpa [#allocation6], 1 }
 0x2cd   :  { %1645 = vsyncpa [#allocation4], 1 }

</bundles_post_ra>
